<compile_context>
chip_gen: v7x
topology: tpu7x:2x2x1
jax: 0.10.0
libtpu: 0.0.40
codegen_flags: <defaults>
</compile_context>

<pallas_src>
import math
from functools import partial

import jax
import jax.numpy as jnp
from jax.experimental import pallas as pl
from jax.experimental.pallas import tpu as pltpu


def _layer_norm(x, gamma, beta, eps=1e-5):
    mu = jnp.mean(x, axis=-1, keepdims=True)
    var = jnp.mean((x - mu) ** 2, axis=-1, keepdims=True)
    return (x - mu) * jax.lax.rsqrt(var + eps) * gamma + beta


def _encoder_layer_kernel(*refs, num_heads, q_tile, compute_dtype,
                          fuse_final_norm, need_weights):
    n_in = 18 if fuse_final_norm else 16
    (src_ref, pos_ref, wqk_ref, bqk_ref, wv_ref, bv_ref, wo_ref, bo_ref,
     g1_ref, be1_ref, w1_ref, b1_ref, w2_ref, b2_ref, g2_ref, be2_ref,
     *extra_in) = refs[:n_in]
    gf_ref, bf_ref = (extra_in if fuse_final_norm else (None, None))

    rest = list(refs[n_in:])
    out_ref = rest.pop(0)
    attn_ref = rest.pop(0) if need_weights else None
    normed_ref = rest.pop(0) if fuse_final_norm else None
    q_scr, k_scr, v_scr = rest                      # each (H, S, Dh), VMEM

    cd = compute_dtype
    H = num_heads
    _, S, D = src_ref.shape
    Dh = D // H
    tq = q_tile
    qi = pl.program_id(1)

    # ---- once per batch row: full-width projections into head-major scratch
    @pl.when(qi == 0)
    def _():
        x = src_ref[0].astype(jnp.float32)                              # (S, D)
        p = pos_ref[0].astype(jnp.float32)                              # (S, D)
        qk_in = (x + p).astype(cd)                  # q = k = src + pos (eval)
        # Full-depth / full-width MXU matmuls (scale folded into the Q half).
        qk = jnp.dot(qk_in, wqk_ref[...],
                     preferred_element_type=jnp.float32) + bqk_ref[0]   # (S, 2D)
        v = jnp.dot(x.astype(cd), wv_ref[...],
                    preferred_element_type=jnp.float32) + bv_ref[0]     # (S, D)
        # Head split into (H, S, Dh) scratch: 3*H small slice-copies, done
        # once per batch row (kept as static slices instead of a lane-splitting
        # reshape; all matmuls stay full-width or head-batched).
        for h in range(H):
            lo = h * Dh
            q_scr[h] = qk[:, lo:lo + Dh].astype(cd)
            k_scr[h] = qk[:, D + lo:D + lo + Dh].astype(cd)
            v_scr[h] = v[:, lo:lo + Dh].astype(cd)

    # ---- per query tile --------------------------------------------------
    row0 = pl.multiple_of(qi * tq, tq)
    x_t = src_ref[0, pl.ds(row0, tq), :].astype(jnp.float32)            # (tq, D)
    q_t = q_scr[:, pl.ds(row0, tq), :]                                  # (H, tq, Dh)

    # Scores: single batched dot_general over heads (1/sqrt(Dh) pre-folded).
    s = jnp.einsum('hqe,hke->hqk', q_t, k_scr[...],
                   preferred_element_type=jnp.float32)                  # (H, tq, S)
    s = s - jnp.max(s, axis=-1, keepdims=True)
    e = jnp.exp(s)
    a = e * (1.0 / jnp.sum(e, axis=-1, keepdims=True))   # exact: rows sum to 1

    ctx = jnp.einsum('hqk,hke->hqe', a.astype(cd), v_scr[...],
                     preferred_element_type=jnp.float32)                # (H, tq, Dh)
    out_h = jnp.einsum('hqe,hed->hqd', ctx.astype(cd), wo_ref[...],
                       preferred_element_type=jnp.float32)              # (H, tq, D)
    attn_out = jnp.sum(out_h, axis=0) + bo_ref[0]                       # (tq, D)

    # residual + norm1
    x1 = _layer_norm(x_t + attn_out, g1_ref[0], be1_ref[0])

    # FFN: linear1 -> relu -> linear2 (bf16 operands, f32 accumulation)
    ff = jnp.dot(x1.astype(cd), w1_ref[...],
                 preferred_element_type=jnp.float32) + b1_ref[0]
    ff = jnp.maximum(ff, 0.0)
    ff = jnp.dot(ff.astype(cd), w2_ref[...],
                 preferred_element_type=jnp.float32) + b2_ref[0]

    # residual + norm2
    y = _layer_norm(x1 + ff, g2_ref[0], be2_ref[0])
    out_ref[0] = y.astype(out_ref.dtype)

    if need_weights:
        # Head-averaged attention weights (torch need_weights=True default).
        attn_ref[0] = jnp.mean(a, axis=0).astype(attn_ref.dtype)

    if fuse_final_norm:
        normed_ref[0] = _layer_norm(y, gf_ref[0], bf_ref[0]).astype(normed_ref.dtype)


def _pack_layer_params(params, num_heads, compute_dtype):
    """Fused/scaled/head-major weights in compute dtype (plain XLA, once per call)."""
    D = params["wq"].shape[0]
    H = num_heads
    Dh = D // H
    scale = 1.0 / math.sqrt(Dh)
    wqk = jnp.concatenate([params["wq"] * scale, params["wk"]], axis=1)   # (D, 2D)
    bqk = jnp.concatenate([params["bq"] * scale, params["bk"]], axis=1)   # (1, 2D)
    return dict(
        wqk=wqk.astype(compute_dtype), bqk=bqk.astype(jnp.float32),
        wv=params["wv"].astype(compute_dtype), bv=params["bv"].astype(jnp.float32),
        wo=params["wo"].reshape(H, Dh, D).astype(compute_dtype),          # head-major
        bo=params["bo"].astype(jnp.float32),
        g1=params["g1"], be1=params["be1"],
        w1=params["w1"].astype(compute_dtype), b1=params["b1"],
        w2=params["w2"].astype(compute_dtype), b2=params["b2"],
        g2=params["g2"], be2=params["be2"],
    )


def _choose_q_tile(S):
    if S <= 256:
        return S
    for t in (256, 128):
        if S % t == 0:
            return t
    # TODO(synk): pad ragged sequence lengths to a tile multiple (with key
    # masking) instead of falling back to a single full-S tile.
    return S


def _vmem_limit_bytes():
    """Per-generation VMEM budget: headroom on v7x (64 MiB/TC), more of the
    128 MiB on v5e/v6e.  Returns None to keep the compiler default."""
    try:
        cap = int(pltpu.get_tpu_info().vmem_capacity_bytes)
    except Exception:
        return None
    if cap <= 0:
        return None
    return min(max(cap - 16 * 1024 * 1024, 32 * 1024 * 1024), 100 * 1024 * 1024)


def encoder_layer_forward(src_bsd, pos_bsd, params, num_heads, *,
                          final_norm=None, need_weights=True, q_tile=None,
                          compute_dtype=jnp.bfloat16):
    B, S, D = src_bsd.shape
    H = num_heads
    Dh = D // H
    DFF = params["w1"].shape[1]
    tq = _choose_q_tile(S) if q_tile is None else q_tile
    assert S % tq == 0 and (tq % 8 == 0 or tq == S)
    nq = S // tq
    fuse = final_norm is not None
    pk = _pack_layer_params(params, num_heads, compute_dtype)

    def cspec(shape):
        # Constant-index weight/bias block: never re-fetched across the grid,
        # single-buffered to halve its static VMEM footprint.
        index_map = lambda b, q, _r=len(shape): (0,) * _r
        try:
            return pl.BlockSpec(shape, index_map, pipeline_mode=pl.Buffered(1))
        except Exception:   # older BlockSpec without pipeline_mode support
            return pl.BlockSpec(shape, index_map)

    in_specs = [
        pl.BlockSpec((1, S, D), lambda b, q: (b, 0, 0)),   # src (const over q)
        pl.BlockSpec((1, S, D), lambda b, q: (b, 0, 0)),   # pos (const over q)
        cspec((D, 2 * D)), cspec((1, 2 * D)),              # wqk (scaled Q | K), bqk
        cspec((D, D)), cspec((1, D)),                      # wv, bv
        cspec((H, Dh, D)), cspec((1, D)),                  # wo (head-major), bo
        cspec((1, D)), cspec((1, D)),                      # g1, be1
        cspec((D, DFF)), cspec((1, DFF)),                  # w1, b1
        cspec((DFF, D)), cspec((1, D)),                    # w2, b2
        cspec((1, D)), cspec((1, D)),                      # g2, be2
    ]
    inputs = [src_bsd, pos_bsd, pk["wqk"], pk["bqk"], pk["wv"], pk["bv"],
              pk["wo"], pk["bo"], pk["g1"], pk["be1"], pk["w1"], pk["b1"],
              pk["w2"], pk["b2"], pk["g2"], pk["be2"]]
    if fuse:
        in_specs += [cspec((1, D)), cspec((1, D))]          # final-norm gamma/beta
        inputs += [final_norm["g"], final_norm["b"]]

    out_specs = [pl.BlockSpec((1, tq, D), lambda b, q: (b, q, 0))]
    out_shape = [jax.ShapeDtypeStruct((B, S, D), src_bsd.dtype)]
    if need_weights:
        out_specs.append(pl.BlockSpec((1, tq, S), lambda b, q: (b, q, 0)))
        out_shape.append(jax.ShapeDtypeStruct((B, S, S), jnp.float32))
    if fuse:
        out_specs.append(pl.BlockSpec((1, tq, D), lambda b, q: (b, q, 0)))
        out_shape.append(jax.ShapeDtypeStruct((B, S, D), src_bsd.dtype))

    scratch_shapes = [pltpu.VMEM((H, S, Dh), compute_dtype) for _ in range(3)]

    cp_kwargs = dict(dimension_semantics=("parallel", "arbitrary"))
    vl = _vmem_limit_bytes()
    if vl is not None:
        cp_kwargs["vmem_limit_bytes"] = vl

    fn = pl.pallas_call(
        partial(_encoder_layer_kernel, num_heads=num_heads, q_tile=tq,
                compute_dtype=compute_dtype, fuse_final_norm=fuse,
                need_weights=need_weights),
        grid_spec=pltpu.PrefetchScalarGridSpec(
            num_scalar_prefetch=0, grid=(B, nq),
            in_specs=in_specs, out_specs=out_specs,
            scratch_shapes=scratch_shapes),
        out_shape=out_shape,
        compiler_params=pltpu.CompilerParams(**cp_kwargs),
    )
    res = fn(*inputs)

    output = res[0]
    idx = 1
    attn = None
    if need_weights:
        attn = res[idx]
        idx += 1
    normed = res[idx] if fuse else None
    return output, attn, normed


def transformer_encoder_forward(src_sbd, layer_params_list, num_heads,
                                mask=None, src_key_padding_mask=None,
                                pos_sbd=None, norm_params=None,
                                need_weights=True, q_tile=None,
                                compute_dtype=jnp.bfloat16):
    """Mirrors TransformerEncoder.forward: returns (output, output_list, attn_list)."""
    # TODO(synk): attn_mask / src_key_padding_mask are not implemented (None only).
    assert mask is None and src_key_padding_mask is None

    src_bsd = jnp.transpose(src_sbd, (1, 0, 2))
    pos_bsd = (jnp.zeros_like(src_bsd) if pos_sbd is None
               else jnp.transpose(pos_sbd, (1, 0, 2)))

    output = src_bsd
    layer_outputs, attn_list = [], []
    final_output = None
    n_layers = len(layer_params_list)
    for i, params in enumerate(layer_params_list):
        fuse = (norm_params is not None) and (i == n_layers - 1)
        output, attn, normed = encoder_layer_forward(
            output, pos_bsd, params, num_heads,
            final_norm=(norm_params if fuse else None),
            need_weights=need_weights, q_tile=q_tile,
            compute_dtype=compute_dtype)
        layer_outputs.append(output)        # kept batch-major inside the loop
        attn_list.append(attn)              # (B, S, S) head-averaged (or None)
        if fuse:
            final_output = normed

    if norm_params is None:
        result = output
    elif final_output is not None:
        result = final_output               # final norm fused into last layer
    else:  # zero layers: norm the input directly (plain XLA, negligible)
        result = _layer_norm(output, norm_params["g"], norm_params["b"])

    # seq-first (S, B, D) layouts materialized once, after the layer loop.
    output_list = [jnp.transpose(o, (1, 0, 2)) for o in layer_outputs]
    return jnp.transpose(result, (1, 0, 2)), output_list, attn_list


def init_layer_params(key, d_model, dff):
    # NOTE: weights are stored for the `x @ W` convention; when importing from
    # torch.nn.MultiheadAttention, split in_proj_weight (3D, D) and transpose.
    ks = jax.random.split(key, 8)
    s = 0.02
    return {
        "wq": s * jax.random.normal(ks[0], (d_model, d_model), jnp.float32),
        "wk": s * jax.random.normal(ks[1], (d_model, d_model), jnp.float32),
        "wv": s * jax.random.normal(ks[2], (d_model, d_model), jnp.float32),
        "bq": jnp.zeros((1, d_model), jnp.float32),
        "bk": jnp.zeros((1, d_model), jnp.float32),
        "bv": jnp.zeros((1, d_model), jnp.float32),
        "wo": s * jax.random.normal(ks[3], (d_model, d_model), jnp.float32),
        "bo": jnp.zeros((1, d_model), jnp.float32),
        "g1": jnp.ones((1, d_model), jnp.float32),
        "be1": jnp.zeros((1, d_model), jnp.float32),
        "w1": s * jax.random.normal(ks[4], (d_model, dff), jnp.float32),
        "b1": jnp.zeros((1, dff), jnp.float32),
        "w2": s * jax.random.normal(ks[5], (dff, d_model), jnp.float32),
        "b2": jnp.zeros((1, d_model), jnp.float32),
        "g2": jnp.ones((1, d_model), jnp.float32),
        "be2": jnp.zeros((1, d_model), jnp.float32),
    }


if __name__ == "__main__":
    S, B, D, H, DFF, L = 16, 2, 32, 4, 64, 2

    key = jax.random.PRNGKey(0)
    k_src, k_pos, k_par = jax.random.split(key, 3)
    src = jax.random.normal(k_src, (S, B, D), jnp.float32)   # (seq, batch, d_model)
    pos = jax.random.normal(k_pos, (S, B, D), jnp.float32)

    layer_keys = jax.random.split(k_par, L)
    layer_params = [init_layer_params(layer_keys[i], D, DFF) for i in range(L)]
    norm_params = {"g": jnp.ones((1, D), jnp.float32),
                   "b": jnp.zeros((1, D), jnp.float32)}

    out, out_list, attn_list = transformer_encoder_forward(
        src, layer_params, H, pos_sbd=pos, norm_params=norm_params)
    jax.block_until_ready(out)
    for o in out_list:
        jax.block_until_ready(o)
    for a in attn_list:
        jax.block_until_ready(a)

    assert out.shape == (S, B, D)
    assert len(out_list) == L and out_list[0].shape == (S, B, D)
    assert len(attn_list) == L and attn_list[0].shape == (B, S, S)

    # Exercise the multi-query-tile path (grid = (B, 2)) and check that it is
    # consistent with the single-tile path.
    out2, _, attn_list2 = transformer_encoder_forward(
        src, layer_params, H, pos_sbd=pos, norm_params=norm_params, q_tile=8)
    jax.block_until_ready(out2)
    assert jnp.allclose(out, out2, atol=1e-3, rtol=1e-3)
    assert jnp.allclose(attn_list[0], attn_list2[0], atol=1e-3, rtol=1e-3)

    print("KERNEL_OK")
</pallas_src>

<mosaic_0001>
module attributes {stable_mosaic.version = 11 : i64} {
  func.func @_encoder_layer_kernel(%arg0: i32, %arg1: i32, %arg2: memref<1x16x32xf32, #tpu.memory_space<vmem>>, %arg3: memref<1x16x32xf32, #tpu.memory_space<vmem>>, %arg4: memref<32x64xbf16, #tpu.memory_space<vmem>>, %arg5: memref<1x64xf32, #tpu.memory_space<vmem>>, %arg6: memref<32x32xbf16, #tpu.memory_space<vmem>>, %arg7: memref<1x32xf32, #tpu.memory_space<vmem>>, %arg8: memref<4x8x32xbf16, #tpu.memory_space<vmem>>, %arg9: memref<1x32xf32, #tpu.memory_space<vmem>>, %arg10: memref<1x32xf32, #tpu.memory_space<vmem>>, %arg11: memref<1x32xf32, #tpu.memory_space<vmem>>, %arg12: memref<32x64xbf16, #tpu.memory_space<vmem>>, %arg13: memref<1x64xf32, #tpu.memory_space<vmem>>, %arg14: memref<64x32xbf16, #tpu.memory_space<vmem>>, %arg15: memref<1x32xf32, #tpu.memory_space<vmem>>, %arg16: memref<1x32xf32, #tpu.memory_space<vmem>>, %arg17: memref<1x32xf32, #tpu.memory_space<vmem>>, %arg18: memref<1x16x32xf32, #tpu.memory_space<vmem>>, %arg19: memref<1x16x16xf32, #tpu.memory_space<vmem>>, %arg20: memref<4x16x8xbf16, #tpu.memory_space<vmem>>, %arg21: memref<4x16x8xbf16, #tpu.memory_space<vmem>>, %arg22: memref<4x16x8xbf16, #tpu.memory_space<vmem>>) attributes {dimension_semantics = [#tpu.dimension_semantics<parallel>, #tpu.dimension_semantics<arbitrary>], iteration_bounds = array<i64: 2, 1>, scalar_prefetch = 0 : i64, scratch_operands = 3 : i64, tpu.core_type = #tpu.core_type<tc>, window_params = [{transform_indices = @transform_0, window_bounds = array<i64: 1, 16, 32>}, {transform_indices = @transform_1, window_bounds = array<i64: 1, 16, 32>}, {pipeline_mode = #tpu.pipeline_mode<synchronous>, transform_indices = @transform_2, window_bounds = array<i64: 32, 64>}, {pipeline_mode = #tpu.pipeline_mode<synchronous>, transform_indices = @transform_3, window_bounds = array<i64: 1, 64>}, {pipeline_mode = #tpu.pipeline_mode<synchronous>, transform_indices = @transform_4, window_bounds = array<i64: 32, 32>}, {pipeline_mode = #tpu.pipeline_mode<synchronous>, transform_indices = @transform_5, window_bounds = array<i64: 1, 32>}, {pipeline_mode = #tpu.pipeline_mode<synchronous>, transform_indices = @transform_6, window_bounds = array<i64: 4, 8, 32>}, {pipeline_mode = #tpu.pipeline_mode<synchronous>, transform_indices = @transform_7, window_bounds = array<i64: 1, 32>}, {pipeline_mode = #tpu.pipeline_mode<synchronous>, transform_indices = @transform_8, window_bounds = array<i64: 1, 32>}, {pipeline_mode = #tpu.pipeline_mode<synchronous>, transform_indices = @transform_9, window_bounds = array<i64: 1, 32>}, {pipeline_mode = #tpu.pipeline_mode<synchronous>, transform_indices = @transform_10, window_bounds = array<i64: 32, 64>}, {pipeline_mode = #tpu.pipeline_mode<synchronous>, transform_indices = @transform_11, window_bounds = array<i64: 1, 64>}, {pipeline_mode = #tpu.pipeline_mode<synchronous>, transform_indices = @transform_12, window_bounds = array<i64: 64, 32>}, {pipeline_mode = #tpu.pipeline_mode<synchronous>, transform_indices = @transform_13, window_bounds = array<i64: 1, 32>}, {pipeline_mode = #tpu.pipeline_mode<synchronous>, transform_indices = @transform_14, window_bounds = array<i64: 1, 32>}, {pipeline_mode = #tpu.pipeline_mode<synchronous>, transform_indices = @transform_15, window_bounds = array<i64: 1, 32>}, {transform_indices = @transform_16, window_bounds = array<i64: 1, 16, 32>}, {transform_indices = @transform_17, window_bounds = array<i64: 1, 16, 16>}]} {
    %c0_i32 = arith.constant 0 : i32
    %0 = arith.cmpi eq, %arg1, %c0_i32 : i32
    %1 = arith.extui %0 : i1 to i32
    %c0_i32_0 = arith.constant 0 : i32
    %2 = arith.cmpi ne, %1, %c0_i32_0 : i32
    scf.if %2 {
      %c0_58 = arith.constant 0 : index
      %c0_59 = arith.constant 0 : index
      %c0_60 = arith.constant 0 : index
      %120 = vector.load %arg2[%c0_58, %c0_59, %c0_60] : memref<1x16x32xf32, #tpu.memory_space<vmem>>, vector<1x16x32xf32>
      %121 = vector.shape_cast %120 : vector<1x16x32xf32> to vector<16x32xf32>
      %c0_61 = arith.constant 0 : index
      %c0_62 = arith.constant 0 : index
      %c0_63 = arith.constant 0 : index
      %122 = vector.load %arg3[%c0_61, %c0_62, %c0_63] : memref<1x16x32xf32, #tpu.memory_space<vmem>>, vector<1x16x32xf32>
      %123 = vector.shape_cast %122 : vector<1x16x32xf32> to vector<16x32xf32>
      %124 = arith.addf %121, %123 : vector<16x32xf32>
      %125 = arith.truncf %124 : vector<16x32xf32> to vector<16x32xbf16>
      %c0_64 = arith.constant 0 : index
      %c0_65 = arith.constant 0 : index
      %126 = vector.load %arg4[%c0_64, %c0_65] : memref<32x64xbf16, #tpu.memory_space<vmem>>, vector<32x64xbf16>
      %cst_66 = arith.constant dense<0.000000e+00> : vector<16x64xf32>
      %127 = tpu.matmul %125, %126, %cst_66 {dimension_numbers = #tpu.dot_dimension_numbers<[1], [0], [0], [1], [0, 0, 1, 1], [], []>} : vector<16x32xbf16>, vector<32x64xbf16>, vector<16x64xf32> -> vector<16x64xf32>
      %c0_67 = arith.constant 0 : index
      %c0_68 = arith.constant 0 : index
      %128 = vector.load %arg5[%c0_67, %c0_68] : memref<1x64xf32, #tpu.memory_space<vmem>>, vector<1x64xf32>
      %129 = vector.shape_cast %128 : vector<1x64xf32> to vector<64xf32>
      %130 = vector.shape_cast %129 : vector<64xf32> to vector<1x64xf32>
      %131 = vector.broadcast %130 : vector<1x64xf32> to vector<16x64xf32>
      %132 = arith.addf %127, %131 : vector<16x64xf32>
      %133 = arith.truncf %121 : vector<16x32xf32> to vector<16x32xbf16>
      %c0_69 = arith.constant 0 : index
      %c0_70 = arith.constant 0 : index
      %134 = vector.load %arg6[%c0_69, %c0_70] : memref<32x32xbf16, #tpu.memory_space<vmem>>, vector<32x32xbf16>
      %cst_71 = arith.constant dense<0.000000e+00> : vector<16x32xf32>
      %135 = tpu.matmul %133, %134, %cst_71 {dimension_numbers = #tpu.dot_dimension_numbers<[1], [0], [0], [1], [0, 0, 1, 1], [], []>} : vector<16x32xbf16>, vector<32x32xbf16>, vector<16x32xf32> -> vector<16x32xf32>
      %c0_72 = arith.constant 0 : index
      %c0_73 = arith.constant 0 : index
      %136 = vector.load %arg7[%c0_72, %c0_73] : memref<1x32xf32, #tpu.memory_space<vmem>>, vector<1x32xf32>
      %137 = vector.shape_cast %136 : vector<1x32xf32> to vector<32xf32>
      %138 = vector.shape_cast %137 : vector<32xf32> to vector<1x32xf32>
      %139 = vector.broadcast %138 : vector<1x32xf32> to vector<16x32xf32>
      %140 = arith.addf %135, %139 : vector<16x32xf32>
      %141 = vector.extract_strided_slice %132 {offsets = [0, 0], sizes = [16, 8], strides = [1, 1]} : vector<16x64xf32> to vector<16x8xf32>
      %142 = arith.truncf %141 : vector<16x8xf32> to vector<16x8xbf16>
      %c0_74 = arith.constant 0 : index
      %c0_75 = arith.constant 0 : index
      %c0_76 = arith.constant 0 : index
      %143 = vector.load %arg20[%c0_74, %c0_75, %c0_76] : memref<4x16x8xbf16, #tpu.memory_space<vmem>>, vector<1x16x8xbf16>
      %144 = vector.shape_cast %143 : vector<1x16x8xbf16> to vector<16x8xbf16>
      %145 = vector.shape_cast %142 : vector<16x8xbf16> to vector<1x16x8xbf16>
      tpu.vector_store %arg20[%c0_74, %c0_75, %c0_76], %145 {strides = array<i32>} : memref<4x16x8xbf16, #tpu.memory_space<vmem>>, vector<1x16x8xbf16>,
      %146 = vector.extract_strided_slice %132 {offsets = [0, 32], sizes = [16, 8], strides = [1, 1]} : vector<16x64xf32> to vector<16x8xf32>
      %147 = arith.truncf %146 : vector<16x8xf32> to vector<16x8xbf16>
      %c0_77 = arith.constant 0 : index
      %c0_78 = arith.constant 0 : index
      %c0_79 = arith.constant 0 : index
      %148 = vector.load %arg21[%c0_77, %c0_78, %c0_79] : memref<4x16x8xbf16, #tpu.memory_space<vmem>>, vector<1x16x8xbf16>
      %149 = vector.shape_cast %148 : vector<1x16x8xbf16> to vector<16x8xbf16>
      %150 = vector.shape_cast %147 : vector<16x8xbf16> to vector<1x16x8xbf16>
      tpu.vector_store %arg21[%c0_77, %c0_78, %c0_79], %150 {strides = array<i32>} : memref<4x16x8xbf16, #tpu.memory_space<vmem>>, vector<1x16x8xbf16>,
      %151 = vector.extract_strided_slice %140 {offsets = [0, 0], sizes = [16, 8], strides = [1, 1]} : vector<16x32xf32> to vector<16x8xf32>
      %152 = arith.truncf %151 : vector<16x8xf32> to vector<16x8xbf16>
      %c0_80 = arith.constant 0 : index
      %c0_81 = arith.constant 0 : index
      %c0_82 = arith.constant 0 : index
      %153 = vector.load %arg22[%c0_80, %c0_81, %c0_82] : memref<4x16x8xbf16, #tpu.memory_space<vmem>>, vector<1x16x8xbf16>
      %154 = vector.shape_cast %153 : vector<1x16x8xbf16> to vector<16x8xbf16>
      %155 = vector.shape_cast %152 : vector<16x8xbf16> to vector<1x16x8xbf16>
      tpu.vector_store %arg22[%c0_80, %c0_81, %c0_82], %155 {strides = array<i32>} : memref<4x16x8xbf16, #tpu.memory_space<vmem>>, vector<1x16x8xbf16>,
      %156 = vector.extract_strided_slice %132 {offsets = [0, 8], sizes = [16, 8], strides = [1, 1]} : vector<16x64xf32> to vector<16x8xf32>
      %157 = arith.truncf %156 : vector<16x8xf32> to vector<16x8xbf16>
      %c1 = arith.constant 1 : index
      %c0_83 = arith.constant 0 : index
      %c0_84 = arith.constant 0 : index
      %158 = vector.load %arg20[%c1, %c0_83, %c0_84] : memref<4x16x8xbf16, #tpu.memory_space<vmem>>, vector<1x16x8xbf16>
      %159 = vector.shape_cast %158 : vector<1x16x8xbf16> to vector<16x8xbf16>
      %160 = vector.shape_cast %157 : vector<16x8xbf16> to vector<1x16x8xbf16>
      tpu.vector_store %arg20[%c1, %c0_83, %c0_84], %160 {strides = array<i32>} : memref<4x16x8xbf16, #tpu.memory_space<vmem>>, vector<1x16x8xbf16>,
      %161 = vector.extract_strided_slice %132 {offsets = [0, 40], sizes = [16, 8], strides = [1, 1]} : vector<16x64xf32> to vector<16x8xf32>
      %162 = arith.truncf %161 : vector<16x8xf32> to vector<16x8xbf16>
      %c1_85 = arith.constant 1 : index
      %c0_86 = arith.constant 0 : index
      %c0_87 = arith.constant 0 : index
      %163 = vector.load %arg21[%c1_85, %c0_86, %c0_87] : memref<4x16x8xbf16, #tpu.memory_space<vmem>>, vector<1x16x8xbf16>
      %164 = vector.shape_cast %163 : vector<1x16x8xbf16> to vector<16x8xbf16>
      %165 = vector.shape_cast %162 : vector<16x8xbf16> to vector<1x16x8xbf16>
      tpu.vector_store %arg21[%c1_85, %c0_86, %c0_87], %165 {strides = array<i32>} : memref<4x16x8xbf16, #tpu.memory_space<vmem>>, vector<1x16x8xbf16>,
      %166 = vector.extract_strided_slice %140 {offsets = [0, 8], sizes = [16, 8], strides = [1, 1]} : vector<16x32xf32> to vector<16x8xf32>
      %167 = arith.truncf %166 : vector<16x8xf32> to vector<16x8xbf16>
      %c1_88 = arith.constant 1 : index
      %c0_89 = arith.constant 0 : index
      %c0_90 = arith.constant 0 : index
      %168 = vector.load %arg22[%c1_88, %c0_89, %c0_90] : memref<4x16x8xbf16, #tpu.memory_space<vmem>>, vector<1x16x8xbf16>
      %169 = vector.shape_cast %168 : vector<1x16x8xbf16> to vector<16x8xbf16>
      %170 = vector.shape_cast %167 : vector<16x8xbf16> to vector<1x16x8xbf16>
      tpu.vector_store %arg22[%c1_88, %c0_89, %c0_90], %170 {strides = array<i32>} : memref<4x16x8xbf16, #tpu.memory_space<vmem>>, vector<1x16x8xbf16>,
      %171 = vector.extract_strided_slice %132 {offsets = [0, 16], sizes = [16, 8], strides = [1, 1]} : vector<16x64xf32> to vector<16x8xf32>
      %172 = arith.truncf %171 : vector<16x8xf32> to vector<16x8xbf16>
      %c2 = arith.constant 2 : index
      %c0_91 = arith.constant 0 : index
      %c0_92 = arith.constant 0 : index
      %173 = vector.load %arg20[%c2, %c0_91, %c0_92] : memref<4x16x8xbf16, #tpu.memory_space<vmem>>, vector<1x16x8xbf16>
      %174 = vector.shape_cast %173 : vector<1x16x8xbf16> to vector<16x8xbf16>
      %175 = vector.shape_cast %172 : vector<16x8xbf16> to vector<1x16x8xbf16>
      tpu.vector_store %arg20[%c2, %c0_91, %c0_92], %175 {strides = array<i32>} : memref<4x16x8xbf16, #tpu.memory_space<vmem>>, vector<1x16x8xbf16>,
      %176 = vector.extract_strided_slice %132 {offsets = [0, 48], sizes = [16, 8], strides = [1, 1]} : vector<16x64xf32> to vector<16x8xf32>
      %177 = arith.truncf %176 : vector<16x8xf32> to vector<16x8xbf16>
      %c2_93 = arith.constant 2 : index
      %c0_94 = arith.constant 0 : index
      %c0_95 = arith.constant 0 : index
      %178 = vector.load %arg21[%c2_93, %c0_94, %c0_95] : memref<4x16x8xbf16, #tpu.memory_space<vmem>>, vector<1x16x8xbf16>
      %179 = vector.shape_cast %178 : vector<1x16x8xbf16> to vector<16x8xbf16>
      %180 = vector.shape_cast %177 : vector<16x8xbf16> to vector<1x16x8xbf16>
      tpu.vector_store %arg21[%c2_93, %c0_94, %c0_95], %180 {strides = array<i32>} : memref<4x16x8xbf16, #tpu.memory_space<vmem>>, vector<1x16x8xbf16>,
      %181 = vector.extract_strided_slice %140 {offsets = [0, 16], sizes = [16, 8], strides = [1, 1]} : vector<16x32xf32> to vector<16x8xf32>
      %182 = arith.truncf %181 : vector<16x8xf32> to vector<16x8xbf16>
      %c2_96 = arith.constant 2 : index
      %c0_97 = arith.constant 0 : index
      %c0_98 = arith.constant 0 : index
      %183 = vector.load %arg22[%c2_96, %c0_97, %c0_98] : memref<4x16x8xbf16, #tpu.memory_space<vmem>>, vector<1x16x8xbf16>
      %184 = vector.shape_cast %183 : vector<1x16x8xbf16> to vector<16x8xbf16>
      %185 = vector.shape_cast %182 : vector<16x8xbf16> to vector<1x16x8xbf16>
      tpu.vector_store %arg22[%c2_96, %c0_97, %c0_98], %185 {strides = array<i32>} : memref<4x16x8xbf16, #tpu.memory_space<vmem>>, vector<1x16x8xbf16>,
      %186 = vector.extract_strided_slice %132 {offsets = [0, 24], sizes = [16, 8], strides = [1, 1]} : vector<16x64xf32> to vector<16x8xf32>
      %187 = arith.truncf %186 : vector<16x8xf32> to vector<16x8xbf16>
      %c3 = arith.constant 3 : index
      %c0_99 = arith.constant 0 : index
      %c0_100 = arith.constant 0 : index
      %188 = vector.load %arg20[%c3, %c0_99, %c0_100] : memref<4x16x8xbf16, #tpu.memory_space<vmem>>, vector<1x16x8xbf16>
      %189 = vector.shape_cast %188 : vector<1x16x8xbf16> to vector<16x8xbf16>
      %190 = vector.shape_cast %187 : vector<16x8xbf16> to vector<1x16x8xbf16>
      tpu.vector_store %arg20[%c3, %c0_99, %c0_100], %190 {strides = array<i32>} : memref<4x16x8xbf16, #tpu.memory_space<vmem>>, vector<1x16x8xbf16>,
      %191 = vector.extract_strided_slice %132 {offsets = [0, 56], sizes = [16, 8], strides = [1, 1]} : vector<16x64xf32> to vector<16x8xf32>
      %192 = arith.truncf %191 : vector<16x8xf32> to vector<16x8xbf16>
      %c3_101 = arith.constant 3 : index
      %c0_102 = arith.constant 0 : index
      %c0_103 = arith.constant 0 : index
      %193 = vector.load %arg21[%c3_101, %c0_102, %c0_103] : memref<4x16x8xbf16, #tpu.memory_space<vmem>>, vector<1x16x8xbf16>
      %194 = vector.shape_cast %193 : vector<1x16x8xbf16> to vector<16x8xbf16>
      %195 = vector.shape_cast %192 : vector<16x8xbf16> to vector<1x16x8xbf16>
      tpu.vector_store %arg21[%c3_101, %c0_102, %c0_103], %195 {strides = array<i32>} : memref<4x16x8xbf16, #tpu.memory_space<vmem>>, vector<1x16x8xbf16>,
      %196 = vector.extract_strided_slice %140 {offsets = [0, 24], sizes = [16, 8], strides = [1, 1]} : vector<16x32xf32> to vector<16x8xf32>
      %197 = arith.truncf %196 : vector<16x8xf32> to vector<16x8xbf16>
      %c3_104 = arith.constant 3 : index
      %c0_105 = arith.constant 0 : index
      %c0_106 = arith.constant 0 : index
      %198 = vector.load %arg22[%c3_104, %c0_105, %c0_106] : memref<4x16x8xbf16, #tpu.memory_space<vmem>>, vector<1x16x8xbf16>
      %199 = vector.shape_cast %198 : vector<1x16x8xbf16> to vector<16x8xbf16>
      %200 = vector.shape_cast %197 : vector<16x8xbf16> to vector<1x16x8xbf16>
      tpu.vector_store %arg22[%c3_104, %c0_105, %c0_106], %200 {strides = array<i32>} : memref<4x16x8xbf16, #tpu.memory_space<vmem>>, vector<1x16x8xbf16>,
    } else {
    }
    %c16_i32 = arith.constant 16 : i32
    %3 = arith.muli %arg1, %c16_i32 : i32
    %4 = tpu.assume_multiple %3, 16 : i32
    %c0 = arith.constant 0 : index
    %5 = arith.index_cast %4 : i32 to index
    %c0_1 = arith.constant 0 : index
    %6 = vector.load %arg2[%c0, %5, %c0_1] : memref<1x16x32xf32, #tpu.memory_space<vmem>>, vector<1x16x32xf32>
    %7 = vector.shape_cast %6 : vector<1x16x32xf32> to vector<16x32xf32>
    %c0_2 = arith.constant 0 : index
    %8 = arith.index_cast %4 : i32 to index
    %c0_3 = arith.constant 0 : index
    %9 = vector.load %arg20[%c0_2, %8, %c0_3] : memref<4x16x8xbf16, #tpu.memory_space<vmem>>, vector<4x16x8xbf16>
    %c0_4 = arith.constant 0 : index
    %c0_5 = arith.constant 0 : index
    %c0_6 = arith.constant 0 : index
    %10 = vector.load %arg21[%c0_4, %c0_5, %c0_6] : memref<4x16x8xbf16, #tpu.memory_space<vmem>>, vector<4x16x8xbf16>
    "tpu.trace_start"() <{level = 10 : i32, message = "hqe,hke->hqk"}> : () -> ()
    %cst = arith.constant dense<0.000000e+00> : vector<4x16x16xf32>
    %11 = tpu.matmul %9, %10, %cst {dimension_numbers = #tpu.dot_dimension_numbers<[2], [2], [1], [1], [0, 0, 0, 1, 1, 1], [0], [0]>} : vector<4x16x8xbf16>, vector<4x16x8xbf16>, vector<4x16x16xf32> -> vector<4x16x16xf32>
    "tpu.trace_stop"() : () -> ()
    %cst_7 = arith.constant dense<0xFF800000> : vector<4x16xf32>
    %12 = vector.multi_reduction <maximumf>, %11, %cst_7 [2] : vector<4x16x16xf32> to vector<4x16xf32>
    %13 = vector.shape_cast %12 : vector<4x16xf32> to vector<4x16x1xf32>
    %14 = vector.broadcast %13 : vector<4x16x1xf32> to vector<4x16x16xf32>
    %15 = arith.subf %11, %14 : vector<4x16x16xf32>
    %16 = math.exp %15 : vector<4x16x16xf32>
    %cst_8 = arith.constant dense<0.000000e+00> : vector<4x16xf32>
    %17 = vector.multi_reduction <add>, %16, %cst_8 [2] : vector<4x16x16xf32> to vector<4x16xf32>
    %18 = vector.shape_cast %17 : vector<4x16xf32> to vector<4x16x1xf32>
    %cst_9 = arith.constant 1.000000e+00 : f32
    %19 = vector.broadcast %cst_9 : f32 to vector<4x16x1xf32>
    %20 = arith.divf %19, %18 : vector<4x16x1xf32>
    %21 = vector.broadcast %20 : vector<4x16x1xf32> to vector<4x16x16xf32>
    %22 = arith.mulf %16, %21 : vector<4x16x16xf32>
    %23 = arith.truncf %22 : vector<4x16x16xf32> to vector<4x16x16xbf16>
    %c0_10 = arith.constant 0 : index
    %c0_11 = arith.constant 0 : index
    %c0_12 = arith.constant 0 : index
    %24 = vector.load %arg22[%c0_10, %c0_11, %c0_12] : memref<4x16x8xbf16, #tpu.memory_space<vmem>>, vector<4x16x8xbf16>
    "tpu.trace_start"() <{level = 10 : i32, message = "hqk,hke->hqe"}> : () -> ()
    %cst_13 = arith.constant dense<0.000000e+00> : vector<4x16x8xf32>
    %25 = tpu.matmul %23, %24, %cst_13 {dimension_numbers = #tpu.dot_dimension_numbers<[2], [1], [1], [2], [0, 0, 0, 1, 1, 2], [0], [0]>} : vector<4x16x16xbf16>, vector<4x16x8xbf16>, vector<4x16x8xf32> -> vector<4x16x8xf32>
    "tpu.trace_stop"() : () -> ()
    %26 = arith.truncf %25 : vector<4x16x8xf32> to vector<4x16x8xbf16>
    %c0_14 = arith.constant 0 : index
    %c0_15 = arith.constant 0 : index
    %c0_16 = arith.constant 0 : index
    %27 = vector.load %arg8[%c0_14, %c0_15, %c0_16] : memref<4x8x32xbf16, #tpu.memory_space<vmem>>, vector<4x8x32xbf16>
    "tpu.trace_start"() <{level = 10 : i32, message = "hqe,hed->hqd"}> : () -> ()
    %cst_17 = arith.constant dense<0.000000e+00> : vector<4x16x32xf32>
    %28 = tpu.matmul %26, %27, %cst_17 {dimension_numbers = #tpu.dot_dimension_numbers<[2], [1], [1], [2], [0, 0, 0, 1, 1, 2], [0], [0]>} : vector<4x16x8xbf16>, vector<4x8x32xbf16>, vector<4x16x32xf32> -> vector<4x16x32xf32>
    "tpu.trace_stop"() : () -> ()
    %cst_18 = arith.constant dense<0.000000e+00> : vector<16x32xf32>
    %29 = vector.multi_reduction <add>, %28, %cst_18 [0] : vector<4x16x32xf32> to vector<16x32xf32>
    %c0_19 = arith.constant 0 : index
    %c0_20 = arith.constant 0 : index
    %30 = vector.load %arg9[%c0_19, %c0_20] : memref<1x32xf32, #tpu.memory_space<vmem>>, vector<1x32xf32>
    %31 = vector.shape_cast %30 : vector<1x32xf32> to vector<32xf32>
    %32 = vector.shape_cast %31 : vector<32xf32> to vector<1x32xf32>
    %33 = vector.broadcast %32 : vector<1x32xf32> to vector<16x32xf32>
    %34 = arith.addf %29, %33 : vector<16x32xf32>
    %35 = arith.addf %7, %34 : vector<16x32xf32>
    %c0_21 = arith.constant 0 : index
    %c0_22 = arith.constant 0 : index
    %36 = vector.load %arg10[%c0_21, %c0_22] : memref<1x32xf32, #tpu.memory_space<vmem>>, vector<1x32xf32>
    %37 = vector.shape_cast %36 : vector<1x32xf32> to vector<32xf32>
    %c0_23 = arith.constant 0 : index
    %c0_24 = arith.constant 0 : index
    %38 = vector.load %arg11[%c0_23, %c0_24] : memref<1x32xf32, #tpu.memory_space<vmem>>, vector<1x32xf32>
    %39 = vector.shape_cast %38 : vector<1x32xf32> to vector<32xf32>
    %cst_25 = arith.constant dense<0.000000e+00> : vector<16xf32>
    %40 = vector.multi_reduction <add>, %35, %cst_25 [1] : vector<16x32xf32> to vector<16xf32>
    %41 = vector.shape_cast %40 : vector<16xf32> to vector<16x1xf32>
    %cst_26 = arith.constant 3.200000e+01 : f32
    %42 = vector.broadcast %cst_26 : f32 to vector<16x1xf32>
    %43 = arith.divf %41, %42 : vector<16x1xf32>
    %44 = vector.broadcast %43 : vector<16x1xf32> to vector<16x32xf32>
    %45 = arith.subf %35, %44 : vector<16x32xf32>
    %46 = arith.mulf %45, %45 : vector<16x32xf32>
    %cst_27 = arith.constant dense<0.000000e+00> : vector<16xf32>
    %47 = vector.multi_reduction <add>, %46, %cst_27 [1] : vector<16x32xf32> to vector<16xf32>
    %48 = vector.shape_cast %47 : vector<16xf32> to vector<16x1xf32>
    %cst_28 = arith.constant 3.200000e+01 : f32
    %49 = vector.broadcast %cst_28 : f32 to vector<16x1xf32>
    %50 = arith.divf %48, %49 : vector<16x1xf32>
    %51 = vector.broadcast %43 : vector<16x1xf32> to vector<16x32xf32>
    %52 = arith.subf %35, %51 : vector<16x32xf32>
    %cst_29 = arith.constant 9.99999974E-6 : f32
    %53 = vector.broadcast %cst_29 : f32 to vector<16x1xf32>
    %54 = arith.addf %50, %53 : vector<16x1xf32>
    %55 = math.rsqrt %54 : vector<16x1xf32>
    %56 = vector.broadcast %55 : vector<16x1xf32> to vector<16x32xf32>
    %57 = arith.mulf %52, %56 : vector<16x32xf32>
    %58 = vector.shape_cast %37 : vector<32xf32> to vector<1x32xf32>
    %59 = vector.broadcast %58 : vector<1x32xf32> to vector<16x32xf32>
    %60 = arith.mulf %57, %59 : vector<16x32xf32>
    %61 = vector.shape_cast %39 : vector<32xf32> to vector<1x32xf32>
    %62 = vector.broadcast %61 : vector<1x32xf32> to vector<16x32xf32>
    %63 = arith.addf %60, %62 : vector<16x32xf32>
    %64 = arith.truncf %63 : vector<16x32xf32> to vector<16x32xbf16>
    %c0_30 = arith.constant 0 : index
    %c0_31 = arith.constant 0 : index
    %65 = vector.load %arg12[%c0_30, %c0_31] : memref<32x64xbf16, #tpu.memory_space<vmem>>, vector<32x64xbf16>
    %cst_32 = arith.constant dense<0.000000e+00> : vector<16x64xf32>
    %66 = tpu.matmul %64, %65, %cst_32 {dimension_numbers = #tpu.dot_dimension_numbers<[1], [0], [0], [1], [0, 0, 1, 1], [], []>} : vector<16x32xbf16>, vector<32x64xbf16>, vector<16x64xf32> -> vector<16x64xf32>
    %c0_33 = arith.constant 0 : index
    %c0_34 = arith.constant 0 : index
    %67 = vector.load %arg13[%c0_33, %c0_34] : memref<1x64xf32, #tpu.memory_space<vmem>>, vector<1x64xf32>
    %68 = vector.shape_cast %67 : vector<1x64xf32> to vector<64xf32>
    %69 = vector.shape_cast %68 : vector<64xf32> to vector<1x64xf32>
    %70 = vector.broadcast %69 : vector<1x64xf32> to vector<16x64xf32>
    %71 = arith.addf %66, %70 : vector<16x64xf32>
    %cst_35 = arith.constant 0.000000e+00 : f32
    %72 = vector.broadcast %cst_35 : f32 to vector<16x64xf32>
    %73 = arith.maximumf %71, %72 : vector<16x64xf32>
    %74 = arith.truncf %73 : vector<16x64xf32> to vector<16x64xbf16>
    %c0_36 = arith.constant 0 : index
    %c0_37 = arith.constant 0 : index
    %75 = vector.load %arg14[%c0_36, %c0_37] : memref<64x32xbf16, #tpu.memory_space<vmem>>, vector<64x32xbf16>
    %cst_38 = arith.constant dense<0.000000e+00> : vector<16x32xf32>
    %76 = tpu.matmul %74, %75, %cst_38 {dimension_numbers = #tpu.dot_dimension_numbers<[1], [0], [0], [1], [0, 0, 1, 1], [], []>} : vector<16x64xbf16>, vector<64x32xbf16>, vector<16x32xf32> -> vector<16x32xf32>
    %c0_39 = arith.constant 0 : index
    %c0_40 = arith.constant 0 : index
    %77 = vector.load %arg15[%c0_39, %c0_40] : memref<1x32xf32, #tpu.memory_space<vmem>>, vector<1x32xf32>
    %78 = vector.shape_cast %77 : vector<1x32xf32> to vector<32xf32>
    %79 = vector.shape_cast %78 : vector<32xf32> to vector<1x32xf32>
    %80 = vector.broadcast %79 : vector<1x32xf32> to vector<16x32xf32>
    %81 = arith.addf %76, %80 : vector<16x32xf32>
    %82 = arith.addf %63, %81 : vector<16x32xf32>
    %c0_41 = arith.constant 0 : index
    %c0_42 = arith.constant 0 : index
    %83 = vector.load %arg16[%c0_41, %c0_42] : memref<1x32xf32, #tpu.memory_space<vmem>>, vector<1x32xf32>
    %84 = vector.shape_cast %83 : vector<1x32xf32> to vector<32xf32>
    %c0_43 = arith.constant 0 : index
    %c0_44 = arith.constant 0 : index
    %85 = vector.load %arg17[%c0_43, %c0_44] : memref<1x32xf32, #tpu.memory_space<vmem>>, vector<1x32xf32>
    %86 = vector.shape_cast %85 : vector<1x32xf32> to vector<32xf32>
    %cst_45 = arith.constant dense<0.000000e+00> : vector<16xf32>
    %87 = vector.multi_reduction <add>, %82, %cst_45 [1] : vector<16x32xf32> to vector<16xf32>
    %88 = vector.shape_cast %87 : vector<16xf32> to vector<16x1xf32>
    %cst_46 = arith.constant 3.200000e+01 : f32
    %89 = vector.broadcast %cst_46 : f32 to vector<16x1xf32>
    %90 = arith.divf %88, %89 : vector<16x1xf32>
    %91 = vector.broadcast %90 : vector<16x1xf32> to vector<16x32xf32>
    %92 = arith.subf %82, %91 : vector<16x32xf32>
    %93 = arith.mulf %92, %92 : vector<16x32xf32>
    %cst_47 = arith.constant dense<0.000000e+00> : vector<16xf32>
    %94 = vector.multi_reduction <add>, %93, %cst_47 [1] : vector<16x32xf32> to vector<16xf32>
    %95 = vector.shape_cast %94 : vector<16xf32> to vector<16x1xf32>
    %cst_48 = arith.constant 3.200000e+01 : f32
    %96 = vector.broadcast %cst_48 : f32 to vector<16x1xf32>
    %97 = arith.divf %95, %96 : vector<16x1xf32>
    %98 = vector.broadcast %90 : vector<16x1xf32> to vector<16x32xf32>
    %99 = arith.subf %82, %98 : vector<16x32xf32>
    %cst_49 = arith.constant 9.99999974E-6 : f32
    %100 = vector.broadcast %cst_49 : f32 to vector<16x1xf32>
    %101 = arith.addf %97, %100 : vector<16x1xf32>
    %102 = math.rsqrt %101 : vector<16x1xf32>
    %103 = vector.broadcast %102 : vector<16x1xf32> to vector<16x32xf32>
    %104 = arith.mulf %99, %103 : vector<16x32xf32>
    %105 = vector.shape_cast %84 : vector<32xf32> to vector<1x32xf32>
    %106 = vector.broadcast %105 : vector<1x32xf32> to vector<16x32xf32>
    %107 = arith.mulf %104, %106 : vector<16x32xf32>
    %108 = vector.shape_cast %86 : vector<32xf32> to vector<1x32xf32>
    %109 = vector.broadcast %108 : vector<1x32xf32> to vector<16x32xf32>
    %110 = arith.addf %107, %109 : vector<16x32xf32>
    %c0_50 = arith.constant 0 : index
    %c0_51 = arith.constant 0 : index
    %c0_52 = arith.constant 0 : index
    %111 = vector.load %arg18[%c0_50, %c0_51, %c0_52] : memref<1x16x32xf32, #tpu.memory_space<vmem>>, vector<1x16x32xf32>
    %112 = vector.shape_cast %111 : vector<1x16x32xf32> to vector<16x32xf32>
    %113 = vector.shape_cast %110 : vector<16x32xf32> to vector<1x16x32xf32>
    tpu.vector_store %arg18[%c0_50, %c0_51, %c0_52], %113 {strides = array<i32>} : memref<1x16x32xf32, #tpu.memory_space<vmem>>, vector<1x16x32xf32>,
    %cst_53 = arith.constant dense<0.000000e+00> : vector<16x16xf32>
    %114 = vector.multi_reduction <add>, %22, %cst_53 [0] : vector<4x16x16xf32> to vector<16x16xf32>
    %cst_54 = arith.constant 4.000000e+00 : f32
    %115 = vector.broadcast %cst_54 : f32 to vector<16x16xf32>
    %116 = arith.divf %114, %115 : vector<16x16xf32>
    %c0_55 = arith.constant 0 : index
    %c0_56 = arith.constant 0 : index
    %c0_57 = arith.constant 0 : index
    %117 = vector.load %arg19[%c0_55, %c0_56, %c0_57] : memref<1x16x16xf32, #tpu.memory_space<vmem>>, vector<1x16x16xf32>
    %118 = vector.shape_cast %117 : vector<1x16x16xf32> to vector<16x16xf32>
    %119 = vector.shape_cast %116 : vector<16x16xf32> to vector<1x16x16xf32>
    tpu.vector_store %arg19[%c0_55, %c0_56, %c0_57], %119 {strides = array<i32>} : memref<1x16x16xf32, #tpu.memory_space<vmem>>, vector<1x16x16xf32>,
    return
  }
  func.func @transform_0(%arg0: i32, %arg1: i32) -> (i32, i32, i32) {
    %c0_i32 = arith.constant 0 : i32
    %c0_i32_0 = arith.constant 0 : i32
    %c0_i32_1 = arith.constant 0 : i32
    return %arg0, %c0_i32, %c0_i32_0 : i32, i32, i32
  }
  func.func @transform_1(%arg0: i32, %arg1: i32) -> (i32, i32, i32) {
    %c0_i32 = arith.constant 0 : i32
    %c0_i32_0 = arith.constant 0 : i32
    %c0_i32_1 = arith.constant 0 : i32
    return %arg0, %c0_i32, %c0_i32_0 : i32, i32, i32
  }
  func.func @transform_2(%arg0: i32, %arg1: i32) -> (i32, i32) {
    %c0_i32 = arith.constant 0 : i32
    %c0_i32_0 = arith.constant 0 : i32
    %c0_i32_1 = arith.constant 0 : i32
    return %c0_i32, %c0_i32_0 : i32, i32
  }
  func.func @transform_3(%arg0: i32, %arg1: i32) -> (i32, i32) {
    %c0_i32 = arith.constant 0 : i32
    %c0_i32_0 = arith.constant 0 : i32
    %c0_i32_1 = arith.constant 0 : i32
    return %c0_i32, %c0_i32_0 : i32, i32
  }
  func.func @transform_4(%arg0: i32, %arg1: i32) -> (i32, i32) {
    %c0_i32 = arith.constant 0 : i32
    %c0_i32_0 = arith.constant 0 : i32
    %c0_i32_1 = arith.constant 0 : i32
    return %c0_i32, %c0_i32_0 : i32, i32
  }
  func.func @transform_5(%arg0: i32, %arg1: i32) -> (i32, i32) {
    %c0_i32 = arith.constant 0 : i32
    %c0_i32_0 = arith.constant 0 : i32
    %c0_i32_1 = arith.constant 0 : i32
    return %c0_i32, %c0_i32_0 : i32, i32
  }
  func.func @transform_6(%arg0: i32, %arg1: i32) -> (i32, i32, i32) {
    %c0_i32 = arith.constant 0 : i32
    %c0_i32_0 = arith.constant 0 : i32
    %c0_i32_1 = arith.constant 0 : i32
    %c0_i32_2 = arith.constant 0 : i32
    return %c0_i32, %c0_i32_0, %c0_i32_1 : i32, i32, i32
  }
  func.func @transform_7(%arg0: i32, %arg1: i32) -> (i32, i32) {
    %c0_i32 = arith.constant 0 : i32
    %c0_i32_0 = arith.constant 0 : i32
    %c0_i32_1 = arith.constant 0 : i32
    return %c0_i32, %c0_i32_0 : i32, i32
  }
  func.func @transform_8(%arg0: i32, %arg1: i32) -> (i32, i32) {
    %c0_i32 = arith.constant 0 : i32
    %c0_i32_0 = arith.constant 0 : i32
    %c0_i32_1 = arith.constant 0 : i32
    return %c0_i32, %c0_i32_0 : i32, i32
  }
  func.func @transform_9(%arg0: i32, %arg1: i32) -> (i32, i32) {
    %c0_i32 = arith.constant 0 : i32
    %c0_i32_0 = arith.constant 0 : i32
    %c0_i32_1 = arith.constant 0 : i32
    return %c0_i32, %c0_i32_0 : i32, i32
  }
  func.func @transform_10(%arg0: i32, %arg1: i32) -> (i32, i32) {
    %c0_i32 = arith.constant 0 : i32
    %c0_i32_0 = arith.constant 0 : i32
    %c0_i32_1 = arith.constant 0 : i32
    return %c0_i32, %c0_i32_0 : i32, i32
  }
  func.func @transform_11(%arg0: i32, %arg1: i32) -> (i32, i32) {
    %c0_i32 = arith.constant 0 : i32
    %c0_i32_0 = arith.constant 0 : i32
    %c0_i32_1 = arith.constant 0 : i32
    return %c0_i32, %c0_i32_0 : i32, i32
  }
  func.func @transform_12(%arg0: i32, %arg1: i32) -> (i32, i32) {
    %c0_i32 = arith.constant 0 : i32
    %c0_i32_0 = arith.constant 0 : i32
    %c0_i32_1 = arith.constant 0 : i32
    return %c0_i32, %c0_i32_0 : i32, i32
  }
  func.func @transform_13(%arg0: i32, %arg1: i32) -> (i32, i32) {
    %c0_i32 = arith.constant 0 : i32
    %c0_i32_0 = arith.constant 0 : i32
    %c0_i32_1 = arith.constant 0 : i32
    return %c0_i32, %c0_i32_0 : i32, i32
  }
  func.func @transform_14(%arg0: i32, %arg1: i32) -> (i32, i32) {
    %c0_i32 = arith.constant 0 : i32
    %c0_i32_0 = arith.constant 0 : i32
    %c0_i32_1 = arith.constant 0 : i32
    return %c0_i32, %c0_i32_0 : i32, i32
  }
  func.func @transform_15(%arg0: i32, %arg1: i32) -> (i32, i32) {
    %c0_i32 = arith.constant 0 : i32
    %c0_i32_0 = arith.constant 0 : i32
    %c0_i32_1 = arith.constant 0 : i32
    return %c0_i32, %c0_i32_0 : i32, i32
  }
  func.func @transform_16(%arg0: i32, %arg1: i32) -> (i32, i32, i32) {
    %c0_i32 = arith.constant 0 : i32
    %c0_i32_0 = arith.constant 0 : i32
    return %arg0, %arg1, %c0_i32 : i32, i32, i32
  }
  func.func @transform_17(%arg0: i32, %arg1: i32) -> (i32, i32, i32) {
    %c0_i32 = arith.constant 0 : i32
    %c0_i32_0 = arith.constant 0 : i32
    return %arg0, %arg1, %c0_i32 : i32, i32, i32
  }
}

</mosaic_0001>

<bundles_post_ra>
// kernel: tpu_custom_call.1
= control target key start
LH: loop header
LB: loop body
LE: loop exit
PB: predicated region body
PF: predicated region fallthrough
CT: control target
= control target key end

     0   :  { %s3485_s0 = inlined_call_operand.vmem [shape: f32[2,16,32], index: 0, kind: input, shape index: {}]   ;;  %s3486_s1 = inlined_call_operand.hbm [shape: f32[2,16,32], index: 1, kind: input, shape index: {}]   ;;  %s3487_s2 = inlined_call_operand.vmem [shape: bf16[32,64], index: 2, kind: input, shape index: {}]   ;;  %s3488_s3 = inlined_call_operand.vmem [shape: f32[1,64], index: 3, kind: input, shape index: {}]   ;;  %s3489_s4 = inlined_call_operand.hbm [shape: bf16[32,32], index: 4, kind: input, shape index: {}]   ;;  %s3490_s5 = inlined_call_operand.vmem [shape: f32[1,32], index: 5, kind: input, shape index: {}]   ;;  %s3491_s6 = inlined_call_operand.hbm [shape: bf16[4,8,32], index: 6, kind: input, shape index: {}]   ;;  %s3492_s7 = inlined_call_operand.hbm [shape: f32[1,32], index: 7, kind: input, shape index: {}]   ;;  %s3493_s8 = inlined_call_operand.hbm [shape: f32[1,32], index: 8, kind: input, shape index: {}]   ;;  %s3494_s9 = inlined_call_operand.hbm [shape: f32[1,32], index: 9, kind: input, shape index: {}]   ;;  %s3495_s10 = inlined_call_operand.vmem [shape: bf16[32,64], index: 10, kind: input, shape index: {}]   ;;  %s3496_s11 = inlined_call_operand.vmem [shape: f32[1,64], index: 11, kind: input, shape index: {}]   ;;  %s3497_s12 = inlined_call_operand.vmem [shape: bf16[64,32], index: 12, kind: input, shape index: {}]   ;;  %s3498_s13 = inlined_call_operand.vmem [shape: f32[1,32], index: 13, kind: input, shape index: {}]   ;;  %s3499_s14 = inlined_call_operand.vmem [shape: f32[1,32], index: 14, kind: input, shape index: {}]   ;;  %s3500_s15 = inlined_call_operand.vmem [shape: f32[1,32], index: 15, kind: input, shape index: {}]   ;;  %s3501_s16 = inlined_call_operand.hbm [shape: f32[2,16,32], index: 16, kind: output, shape index: {0}]   ;;  %s3502_s17 = inlined_call_operand.hbm [shape: f32[2,16,16], index: 17, kind: output, shape index: {1}]  }
   0x1   :  { %3515 = sst [smem:[#allocation25_spill]] %s3485_s0 }
   0x2   :  { %3516 = sst [smem:[#allocation26_spill]] %s3486_s1 }
   0x3   :  { %3517 = sst [smem:[#allocation27_spill]] %s3487_s2 }
   0x4   :  { %3518 = sst [smem:[#allocation28_spill]] %s3488_s3 }
   0x5   :  { %3519 = sst [smem:[#allocation29_spill]] %s3489_s4 }
   0x6   :  { %3520 = sst [smem:[#allocation30_spill]] %s3490_s5 }
   0x7   :  { %3521 = sst [smem:[#allocation31_spill]] %s3495_s10 }
   0x8   :  { %3522 = sst [smem:[#allocation32_spill]] %s3496_s11 }
   0x9   :  { %3523 = sst [smem:[#allocation33_spill]] %s3497_s12 }
   0xa   :  { %3524 = sst [smem:[#allocation34_spill]] %s3498_s13 }
   0xb   :  { %3525 = sst [smem:[#allocation35_spill]] %s3499_s14 }
   0xc   :  { %3526 = sst [smem:[#allocation36_spill]] %s3500_s15 }
   0xd   :  { %3527 = sst [smem:[#allocation37_spill]] %s3501_s16 }
   0xe   :  { %3528 = sst [smem:[#allocation38_spill]] %s3502_s17 }
   0xf   :  { %23 = vsyncpa [#allocation6], 0 }
  0x10   :  { %25 = vsyncpa [#allocation6 + $0x1], 0 }
  0x11   :  { %26 = vsyncpa [#allocation9], 0 }
  0x12   :  { %27 = vsyncpa [#allocation12], 0 }
  0x13   :  { %28 = vsyncpa [#allocation15], 0 }
  0x14   :  { %29 = vsyncpa [#allocation7], 0 }
  0x15   :  { %31 = vsyncpa [#allocation7 + $0x1], 0 }
  0x16   :  { %32 = vsyncpa [#allocation18], 0 }
  0x17   :  { %34 = vsyncpa [#allocation18 + $0x1], 0  ;;  %s2895_s24 = smov 0   ;;  %s2897_s25 = smov 0  }
  0x18   :  { %s2899_s26 = smov 0   ;;  %s2901_s27 = smov 0  }
  0x19   :  { %s2903_s28 = smov 0   ;;  %s2905_s29 = smov 0  }
  0x1a LB: > { %s3504_s0 = sadd.s32 4294967295, %s2780_s29   ;;  %p2087_p0 = scmp.ge.s32.totalorder %s2780_s29, 1  ;;  %s2780_s29 = sphi %s2905_s29, %s40_s29   ;;  %s2776_s28 = sphi %s2903_s28, %s3565_s28   ;;  %s2772_s27 = sphi %s2901_s27, %s3564_s27   ;;  %s2768_s26 = sphi %s2899_s26, %s3563_s26   ;;  %s2764_s25 = sphi %s2897_s25, %s3562_s25   ;;  %s2760_s24 = sphi %s2895_s24, %s3561_s24  }
  0x1b   : > { %p2929_p1 = scmp.eq.s32.totalorder %s3504_s0, 0  ;;  %p459_p2 = scmp.lt.s32.totalorder %s2780_s29, 3 }
  0x1c   : > { %s2782_s19 = smov [#allocation8]   ;;  %s2783_s21 = smov [#allocation11]  }
  0x1d   : > { %s3529_s30 = scalar_select %p2929_p1, 1, 0 }
  0x1e   : > { %p2934_p3 = pnand %p2087_p0, %p459_p2  ;;  %s477_s1 = sshll.u32 %s2782_s19, 4  ;;  %s2938_s1 = int_to_ptr.vmem [resolvable:$true] %s477_s1 }
  0x1f   : > { %s507_s22 = sshll.u32 %s2783_s21, 4  ;;  %s2784_s23 = smov [#allocation10]   ;;  %s2949_s22 = int_to_ptr.vmem [resolvable:$true] %s507_s22 }
  0x20   : > { %s3530_s18 = scalar_select %p2934_p3, 1, 0 }
  0x21   : > { %p2327_p4 = pneg %p2934_p3  ;;  %s2951_s0 = sshll.u32 %s2784_s23, 4  ;;  %s494_s0 = int_to_ptr.vmem [resolvable:$true] %s2951_s0 }
  0x22   : > { %s3532_s4 = sld [smem:[#allocation29_spill]] }
  0x23   : > { %p2945_p6 = pnand %p2327_p4, %p2929_p1 }
  0x25   : > { %p2961_p8 = pneg %p2945_p6 }
  0x28   : > { %s2484_s15 = scalar_lea.hbm %s3532_s4, 256 }
  0x29   : > { %p2485_p7 = scmp.ne.s32.totalorder %s3532_s4, %s2484_s15  ;;  %p2491_p11 = scmp.lt.u32.totalorder %s2484_s15, %s3532_s4 }
  0x2b   : > { %p2487_p9 = pnand %p2961_p8, %p2485_p7 }
  0x2d   : > { %p2488_p10 = pneg %p2487_p9 }
  0x2f   : > { %p2493_p12 = pnand %p2491_p11, %p2488_p10 }
  0x31   : > { %2496 = shalt.err (!%p2493_p12)
}
  0x32   : > { %s2497_s14 = scalar_lea.vmem %s2938_s1, 256  ;;  %p2505_p4 = scmp.lt.s32.totalorder %s2938_s1, %s2938_s1 }
  0x33   : > { %p2498_p13 = scmp.ne.s32.totalorder %s2938_s1, %s2497_s14  ;;  %p2506_p5 = scmp.lt.s32.totalorder %s2497_s14, %s2497_s14 }
  0x35   : > { %p2500_p0 = pnand %p2498_p13, %p2961_p8  ;;  %p2507_p7 = por %p2506_p5, %p2505_p4 }
  0x37   : > { %p2501_p2 = pneg %p2500_p0 }
  0x39   : > { %p2508_p9 = pnand %p2507_p7, %p2501_p2 }
  0x3b   : > { %2511 = shalt.err (!%p2508_p9)
}
  0x3c   : > { %s2785_s16 = smov 64   ;;  %s2786_s15 = smov 4  }
  0x3d   : > { %2330 = dma.hbm_to_vmem [thread:$0]  (!%p2945_p6), %s3532_s4, 256, %s2938_s1, [#allocation9], %s2785_s16, %s2785_s16, %s2786_s15  }
  0x3e   : > { %s2512_s14 = scalar_lea.hbm %s3492_s7, 16 }
  0x3f   : > { %p2513_p5 = scmp.ne.s32.totalorder %s3492_s7, %s2512_s14  ;;  %p2519_p12 = scmp.lt.u32.totalorder %s2512_s14, %s3492_s7 }
  0x41   : > { %p2515_p10 = pnand %p2513_p5, %p2961_p8 }
  0x43   : > { %p2516_p11 = pneg %p2515_p10 }
  0x45   : > { %p2521_p13 = pnand %p2519_p12, %p2516_p11 }
  0x47   : > { %2524 = shalt.err (!%p2521_p13)
}
  0x48   : > { %s2525_s1 = scalar_lea.vmem %s2949_s22, 16  ;;  %s2532_s11 = scalar_lea.vmem %s2949_s22, 32 }
  0x49   : > { %p2526_p0 = scmp.ne.s32.totalorder %s2949_s22, %s2525_s1  ;;  %p2533_p7 = scmp.lt.s32.totalorder %s2949_s22, %s2949_s22 }
  0x4a   : > { %p2534_p9 = scmp.lt.s32.totalorder %s2532_s11, %s2525_s1 }
  0x4b   : > { %p2528_p2 = pnand %p2526_p0, %p2961_p8 }
  0x4c   : > { %p2535_p5 = por %p2534_p9, %p2533_p7 }
  0x4d   : > { %p2529_p4 = pneg %p2528_p2 }
  0x4f   : > { %p2536_p10 = pnand %p2535_p5, %p2529_p4 }
  0x51   : > { %2539 = shalt.err (!%p2536_p10)
}
  0x52   : > { %2336 = dma.hbm_to_vmem [thread:$0]  (!%p2945_p6), %s3492_s7, 16, %s2949_s22, [#allocation12]  }
  0x53   : > { %s2540_s19 = scalar_lea.hbm %s3491_s6, 256 }
  0x54   : > { %p2541_p11 = scmp.ne.s32.totalorder %s3491_s6, %s2540_s19  ;;  %p2547_p0 = scmp.lt.u32.totalorder %s2540_s19, %s3491_s6 }
  0x56   : > { %p2543_p12 = pnand %p2541_p11, %p2961_p8 }
  0x58   : > { %p2544_p13 = pneg %p2543_p12 }
  0x5a   : > { %p2549_p2 = pnand %p2547_p0, %p2544_p13 }
  0x5c   : > { %2552 = shalt.err (!%p2549_p2)
}
  0x5d   : > { %s2553_s11 = scalar_lea.vmem %s494_s0, 256  ;;  %p2561_p5 = scmp.lt.s32.totalorder %s494_s0, %s494_s0 }
  0x5e   : > { %p2554_p4 = scmp.ne.s32.totalorder %s494_s0, %s2553_s11  ;;  %p2562_p10 = scmp.lt.s32.totalorder %s2553_s11, %s2553_s11 }
  0x60   : > { %p2556_p7 = pnand %p2554_p4, %p2961_p8  ;;  %p2563_p3 = por %p2562_p10, %p2561_p5 }
  0x62   : > { %p2557_p9 = pneg %p2556_p7 }
  0x64   : > { %p2564_p1 = pnand %p2563_p3, %p2557_p9 }
  0x66   : > { %2567 = shalt.err (!%p2564_p1)
}
  0x67   : > { %2333 = dma.hbm_to_vmem [thread:$0]  (!%p2945_p6), %s3491_s6, 256, %s494_s0, [#allocation9], %s2785_s16, %s2785_s16, %s2786_s15  }
  0x68   : > { %s2787_s10 = smov [#allocation13]   ;;  %s2788_s17 = smov [#allocation14]  }
  0x69   : > { %s518_s12 = sshll.u32 %s2787_s10, 4  ;;  %s529_s19 = sshll.u32 %s2788_s17, 4  ;;  %s519_s12 = int_to_ptr.vmem [resolvable:$true] %s518_s12  ;;  %s530_s19 = int_to_ptr.vmem [resolvable:$true] %s529_s19 }
  0x6a   : > { %s2568_s14 = scalar_lea.hbm %s3493_s8, 16 }
  0x6b   : > { %p2569_p1 = scmp.ne.s32.totalorder %s3493_s8, %s2568_s14  ;;  %p2575_p12 = scmp.lt.u32.totalorder %s2568_s14, %s3493_s8 }
  0x6d   : > { %p2571_p3 = pnand %p2569_p1, %p2961_p8 }
  0x6f   : > { %p2572_p11 = pneg %p2571_p3 }
  0x71   : > { %p2577_p13 = pnand %p2575_p12, %p2572_p11 }
  0x73   : > { %2580 = shalt.err (!%p2577_p13)
}
  0x74   : > { %s2581_s0 = scalar_lea.vmem %s519_s12, 16  ;;  %s2588_s16 = scalar_lea.vmem %s519_s12, 32 }
  0x75   : > { %p2582_p0 = scmp.ne.s32.totalorder %s519_s12, %s2581_s0  ;;  %p2589_p7 = scmp.lt.s32.totalorder %s519_s12, %s519_s12 }
  0x76   : > { %p2590_p9 = scmp.lt.s32.totalorder %s2588_s16, %s2581_s0 }
  0x77   : > { %p2584_p2 = pnand %p2582_p0, %p2961_p8 }
  0x78   : > { %p2591_p5 = por %p2590_p9, %p2589_p7 }
  0x79   : > { %p2585_p4 = pneg %p2584_p2 }
  0x7b   : > { %p2592_p10 = pnand %p2591_p5, %p2585_p4 }
  0x7d   : > { %2595 = shalt.err (!%p2592_p10)
}
  0x7e   : > { %2339 = dma.hbm_to_vmem [thread:$0]  (!%p2945_p6), %s3493_s8, 16, %s519_s12, [#allocation12]  }
  0x7f   : > { %s2596_s17 = scalar_lea.hbm %s3494_s9, 16 }
  0x80   : > { %p2597_p1 = scmp.ne.s32.totalorder %s3494_s9, %s2596_s17  ;;  %p2603_p12 = scmp.lt.u32.totalorder %s2596_s17, %s3494_s9 }
  0x82   : > { %p2599_p3 = pnand %p2597_p1, %p2961_p8 }
  0x84   : > { %p2600_p11 = pneg %p2599_p3 }
  0x86   : > { %p2605_p13 = pnand %p2603_p12, %p2600_p11 }
  0x88   : > { %2608 = shalt.err (!%p2605_p13)
}
  0x89   : > { %s2609_s11 = scalar_lea.vmem %s530_s19, 16  ;;  %s2616_s12 = scalar_lea.vmem %s530_s19, 32 }
  0x8a   : > { %p2610_p0 = scmp.ne.s32.totalorder %s530_s19, %s2609_s11  ;;  %p2617_p7 = scmp.lt.s32.totalorder %s530_s19, %s530_s19 }
  0x8b   : > { %p2618_p9 = scmp.lt.s32.totalorder %s2616_s12, %s2609_s11 }
  0x8c   : > { %p2612_p2 = pnand %p2610_p0, %p2961_p8 }
  0x8d   : > { %p2619_p5 = por %p2618_p9, %p2617_p7 }
  0x8e   : > { %p2613_p4 = pneg %p2612_p2 }
  0x90   : > { %p2620_p10 = pnand %p2619_p5, %p2613_p4 }
  0x92   : > { %2623 = shalt.err (!%p2620_p10)
}
  0x93   : > { %2342 = dma.hbm_to_vmem [thread:$0]  (!%p2945_p6), %s3494_s9, 16, %s530_s19, [#allocation15]  }
  0x94   : > { %s2086_s13 = sadd.s32 4294967294, %s2780_s29   ;;  %s52_s16 = sadd.s32 1, %s2776_s28 }
  0x95   : > { %s85_s20 = sadd.s32 1, %s2768_s26  ;;  %p54_p8 = scmp.ge.s32.totalorder %s52_s16, 2 }
  0x96   : > { %p92_p1 = scmp.ne.s32.totalorder %s2768_s26, %s2764_s25  ;;  %p93_p3 = scmp.eq.s32.totalorder %s2780_s29, 0 }
  0x97   : > { %p98_p11 = scmp.ne.s32.totalorder %s2764_s25, %s2760_s24  ;;  %s3567_s16 = smov (%p54_p8, %s52_s16), 0 }
  0x98   : > { %p3077_p12 = por %p93_p3, %p92_p1  ;;  %p3535_p13 = scmp.ne.s32.totalorder %s3529_s30, 0 }
  0x99   : > { %s82_s5 = ssub.s32 %s2776_s28, %s3567_s16  ;;  %s3537_s4 = sadd.s32 4294967295, %s2780_s29  }
  0x9a   : > { %p3083_p6 = por %p3535_p13, %p98_p11  ;;  %p418_p0 = scmp.eq.s32.totalorder %s3537_s4, 1 }
  0x9b   : > { %p83_p2 = scmp.eq.s32.totalorder %s82_s5, 0  ;;  %p424_p4 = scmp.eq.s32.totalorder %s2086_s13, 1 }
  0x9c   : > { %p3091_p7 = por %p418_p0, %p92_p1  ;;  %p2359_p9 = scmp.lt.s32.totalorder %s2780_s29, 2 }
  0x9d   : > { %s3097_s17 = scalar_select %p83_p2, %s2768_s26, %s85_s20  }
  0x9e   : > { %s3538_s10 = scalar_select %p3091_p7, 1, 0 }
  0x9f   : > { %p3099_p5 = por %p424_p4, %p98_p11  ;;  %s566_s23 = sand.u32 1, %s2768_s26  }
  0xa0   : > { %s2094_s14 = sshll.u32 %s566_s23, 4  ;;  %s2151_s1 = sshll.u32 %s2776_s28, 8 }
  0xa1   : > { %s3539_s21 = scalar_select %p3099_p5, 1, 0 }
  0xa2   : > { %s3540_s22 = sld [smem:[#allocation26_spill]]  ;;  %s570_s13 = scalar_lea.vmem [#allocation5], %s2094_s14 }
  0xa3   : > { %s577_s5 = sshll.u32 %s570_s13, 4  ;;  %p3114_p10 = pnand %p2359_p9, %p3077_p12  ;;  %s3110_s5 = int_to_ptr.vmem [resolvable:$true] %s577_s5 }
  0xa4   : > { %s3118_s4 = scalar_lea.sflag [#allocation6], %s566_s23 }
  0xa5   : > { %p2626_p1 = pneg %p3114_p10 }
  0xa8   : > { %s3108_s0 = scalar_lea.hbm %s3540_s22, %s2151_s1  ;;  %s2629_s15 = scalar_lea.hbm %s3540_s22, 512 }
  0xa9   : > { %s2624_s11 = scalar_lea.hbm %s3108_s0, 256  ;;  %p2630_p12 = scmp.lt.u32.totalorder %s3108_s0, %s3540_s22 }
  0xaa   : > { %p2625_p8 = scmp.ne.s32.totalorder %s3108_s0, %s2624_s11  ;;  %p2631_p13 = scmp.lt.u32.totalorder %s2629_s15, %s2624_s11 }
  0xab   : > { %p2633_p2 = scmp.lt.u32.totalorder %s2624_s11, %s3108_s0 }
  0xac   : > { %p2627_p3 = pnand %p2626_p1, %p2625_p8  ;;  %p2632_p0 = por %p2631_p13, %p2630_p12 }
  0xae   : > { %p2628_p11 = pneg %p2627_p3  ;;  %p2634_p4 = por %p2633_p2, %p2632_p0 }
  0xb0   : > { %p2635_p9 = pnand %p2634_p4, %p2628_p11 }
  0xb2   : > { %2638 = shalt.err (!%p2635_p9)
}
  0xb3   : > { %s2639_s23 = scalar_lea.vmem %s3110_s5, 256  ;;  %s2789_s14 = smov [#allocation5]  }
  0xb4   : > { %p2640_p8 = scmp.ne.s32.totalorder %s3110_s5, %s2639_s23  ;;  %s2644_s1 = sshll.u32 %s2789_s14, 4  ;;  %s2645_s1 = int_to_ptr.vmem [resolvable:$false] %s2644_s1 }
  0xb5   : > { %s2646_s12 = scalar_lea.vmem %s2645_s1, 512  ;;  %p2647_p7 = scmp.lt.s32.totalorder %s3110_s5, %s2645_s1 }
  0xb6   : > { %p2642_p3 = pnand %p2640_p8, %p2626_p1  ;;  %p2648_p12 = scmp.lt.s32.totalorder %s2646_s12, %s2639_s23 }
  0xb8   : > { %p2643_p5 = pneg %p2642_p3  ;;  %p2649_p13 = por %p2648_p12, %p2647_p7 }
  0xba   : > { %p2650_p0 = pnand %p2649_p13, %p2643_p5 }
  0xbc   : > { %2653 = shalt.err (!%p2650_p0)
}
  0xbd   : > { %s2790_s11 = smov 128   ;;  %s2791_s15 = smov 8  }
  0xbe   : > { %2346 = dma.hbm_to_vmem [thread:$0]  (!%p3114_p10), %s3108_s0, 256, %s3110_s5, %s3118_s4, %s2790_s11, %s2790_s11, %s2791_s15  }
  0xbf   : > { %p3542_p1 = scmp.ne.s32.totalorder %s3530_s18, 0 }
  0xc0   : > { %s3149_s13 = sand.u32 (!%p3542_p1), 1, %s2764_s25  }
  0xc1   : > { %589 = sbr.rel (%p3542_p1) target bundleno = 2683 (0xa7b), region = 84  ;;  %s3152_s23 = sshll.u32 (!%p3542_p1), %s3149_s13, 4 }
  0xc2   : > { %s592_s14 = scalar_lea.sflag (!%p3542_p1), [#allocation6], %s3149_s13  ;;  %s595_s1 = scalar_lea.vmem (!%p3542_p1), [#allocation5], %s3152_s23 }
  0xc8   : > { %2735 = dma.done.wait (%p3083_p6), %s592_s14, 256  }
  0xc9   : > { %2737 = vsyncadd (%p3083_p6), %s592_s14, 4294967040  ;;  %p3543_p7 = scmp.ne.s32.totalorder %s3529_s30, 0 }
  0xcb   : > { %2739 = dma.done.wait (%p3543_p7), [#allocation9], 512  }
  0xcc   : > { %2741 = vsyncadd (%p3543_p7), [#allocation9], 4294966784 }
  0xcd   : > { %2743 = dma.done.wait (%p3543_p7), [#allocation12], 32  }
  0xce   : > { %2745 = vsyncadd (%p3543_p7), [#allocation12], 4294967264 }
  0xcf   : > { %2747 = dma.done.wait (%p3543_p7), [#allocation15], 16  }
  0xd0   : > { %2749 = vsyncadd (%p3543_p7), [#allocation15], 4294967280  ;;  %p676_p6 = scmp.lt.s32.totalorder %s2772_s27, 1  ;;  %v2792_v0 = vmov 0.0   ;;  %vm2793_vm0 = vmmov 0   ;;  %s3544_s5 = sld [smem:[#allocation25_spill]] }
  0xd1   : > { %2193 = vmatprep.subr.bf16.mxu0 %v2792_v0  ;;  %2197 = vmatprep.mubr.msk.bf16.mxu0 %vm2793_vm0, %v2792_v0  ;;  %s3545_s2 = sld [smem:[#allocation27_spill]]  ;;  %v690_v5 = vld [vmem:[%s595_s1] sm:$0xff]  ;;  %v691_v6 = vld [vmem:[%s595_s1 + $0x8] sm:$0xff]  ;;  %vm718_vm1 = vcmask 261120   ;;  %s3546_s3 = sld [smem:[#allocation28_spill]]  ;;  %vm832_vm2 = vcmask 64512  }
  0xd2   : > { %s677_s18 = scalar_select %p676_p6, %s2772_s27, 1  ;;  %2201 = vmatprep.subr.bf16.mxu1 %v2792_v0  ;;  %2205 = vmatprep.mubr.msk.bf16.mxu1 %vm2793_vm0, %v2792_v0  ;;  %v2436_v10 = vld [vmem:[#allocation8] sm:$0xff]   ;;  %v2437_v11 = vld [vmem:[#allocation8 + $0x8] sm:$0xff]   ;;  %vm1092_vm3 = vcmask 130048   ;;  %vm1384_vm4 = vcmask 1043456   ;;  %vm1751_vm5 = vcmask 523264  }
  0xd3   : > { %2202 = vmatpush3.bf16.msra.mxu1 %v2436_v10  ;;  %s2796_s0 = smov 120   ;;  %s2797_s30 = smov 88  }
  0xd4   : > { %s2152_s19 = sshll.u32 %s677_s18, 4  ;;  %2203 = vmatprep.subr.bf16.mxu1 %v2792_v0  ;;  %s2794_s18 = smov 80  }
  0xd5   : > { %s2800_s4 = smov 104   ;;  %s3547_s15 = sld [smem:[#allocation30_spill]] }
  0xd6   : > { %s680_s20 = scalar_lea.vmem %s3544_s5, %s2152_s19  ;;  %s2795_s19 = smov 96  }
  0xd7   : > { %v2434_v1 = vld [vmem:[%s3545_s2] sm:$0xff]   ;;  %v2435_v2 = vld [vmem:[%s3545_s2 + $0x8] sm:$0xff]   ;;  %2204 = vmatpush3.bf16.msra.mxu1 %v2437_v11  ;;  %s2798_s5 = smov 112   ;;  %s3292_s14 = scalar_lea.vmem [#allocation17], %s3152_s23 }
  0xd8   : > { %2194 = vmatpush3.bf16.msra.mxu0 %v2434_v1  ;;  %v3189_v3 = vld [vmem:[%s680_s20] sm:$0xff]  ;;  %v3191_v4 = vld [vmem:[%s680_s20 + $0x8] sm:$0xff]  ;;  %2215 = vmatprep.subr.bf16.mxu1 %v2792_v0  ;;  %s2799_s20 = smov 72   ;;  %s3513_s1 = sshll.u32 %s2772_s27, 8 }
  0xd9   : > { %2195 = vmatprep.subr.bf16.mxu0 %v2792_v0  ;;  %v692_v7 = vadd.f32 %v690_v5, %v3189_v3  ;;  %v693_v8 = vadd.f32 %v691_v6, %v3191_v4  ;;  %v2108_v12 = vld [vmem:[%s3546_s3] ss:$0 sm:$0xff]  ;;  %v763_v15 = vpack.c.bf16 %v3191_v4, %v3189_v3  ;;  %s1869_s12 = scalar_lea.sflag [#allocation18], %s3149_s13  ;;  %p3553_p10 = scmp.ne.s32.totalorder %s3538_s10, 0 }
  0xdb   : > { %v694_v9 = vpack.c.bf16 %v693_v8, %v692_v7  ;;  %2206 = vmatmul.mubr.msk.bf16.vlgmr.msra.gmra.mrb[0].mxu1 %vm718_vm1, %v763_v15  ;;  %v2112_v40 = vld [vmem:[%s3547_s15] ss:$0 sm:$0xff]  ;;  %s3551_s15 = sld [smem:[#allocation34_spill]] }
  0xdc   : > { %2196 = vmatpush3.bf16.msra.mxu0 %v2435_v2  ;;  %2217 = vmatprep.mubr.msk.bf16.mxu1 %vm2793_vm0, %v2792_v0 }
  0xdd   : > { %2209 = vmatprep.subr.bf16.mxu0 %v2792_v0 }
  0xdf   : > { %2198 = vmatmul.mubr.msk.bf16.vlgmr.msra.gmra.mrb[0].mxu0 %vm718_vm1, %v694_v9 }
  0xe0   : > { %2211 = vmatprep.mubr.msk.bf16.mxu0 %vm2793_vm0, %v2792_v0 }
 0x1ae   : > { %v824_v41 = vpop.f32.mrb[0].mxu1 }
 0x1af   : > { %v825_v42 = vadd.f32 %v2112_v40, %v824_v41  ;;  %v2207_v43 = vpop.f32.mrb[1].mxu1 }
 0x1b0   : > { %v827_v44 = vpop.f32.mrb[2].mxu1 }
 0x1b1   : > { %v828_v45 = vadd.f32 %v2112_v40, %v827_v44  ;;  %v2208_v46 = vpop.f32.mrb[3].mxu1 }
 0x1b2   : > { %v756_v13 = vpop.f32.mrb[0].mxu0 }
 0x1b3   : > { %v2199_v14 = vpop.f32.mrb[1].mxu0  ;;  %v757_v17 = vadd.f32 %v2108_v12, %v756_v13  ;;  %v3244_v47 = vpack.c.bf16 %v828_v45, %v825_v42 }
 0x1b4   : > { %v759_v16 = vpop.f32.mrb[2].mxu0 }
 0x1b5   : > { %v760_v18 = vadd.f32 %v2108_v12, %v759_v16  ;;  %v2200_v19 = vpop.f32.mrb[3].mxu0  ;;  %840 = vst.msk [vmem:[#allocation4] sm:$0xff] %vm832_vm2, %v3244_v47 }
 0x1b7   : > { %v831_v20 = vpack.c.bf16 %v760_v18, %v757_v17 }
 0x1b9   : > { %833 = vst.msk [vmem:[#allocation2] sm:$0xff] %vm832_vm2, %v831_v20  ;;  %862 = vrot.lane.b32.xlu1 %v831_v20, %s2794_s18  ;;  %835 = vrot.lane.b32.xlu0 %v831_v20, %s2795_s19  ;;  %s3548_s19 = sld [smem:[#allocation31_spill]] }
 0x1bc   : > { %v1193_v48 = vld [vmem:[#allocation4] sm:$0xff] }
 0x1bd   : > { %841 = vrot.lane.b32.xlu1 %v831_v20, %s2796_s0  ;;  %846 = vrot.lane.b32.xlu0 %v831_v20, %s2797_s30  ;;  %s3552_s30 = sld [smem:[#allocation38_spill]] }
 0x1c0   : > { %v895_v33 = vld [vmem:[#allocation2] sm:$0xff] }
 0x1c1   : > { %857 = vrot.lane.b32.xlu1 %v831_v20, %s2798_s5  ;;  %877 = vrot.lane.b32.xlu0 %v831_v20, %s2799_s20  ;;  %s3550_s20 = sld [smem:[#allocation32_spill]] }
 0x1c5   : > { %872 = vrot.lane.b32.xlu0 %v831_v20, %s2800_s4 }
 0x22b   : > { %v863_v21 = vpop.permute.xlu1 %862  ;;  %v836_v22 = vpop.permute.xlu0 %835 }
 0x22c   : > { %866 = vst.msk [vmem:[#allocation3 + $0x10] sm:$0xff] %vm832_vm2, %v863_v21  ;;  %838 = vst.msk [vmem:[#allocation3] sm:$0xff] %vm832_vm2, %v836_v22 }
 0x22f   : > { %v842_v23 = vpop.permute.xlu1 %841  ;;  %v847_v24 = vpop.permute.xlu0 %846 }
 0x230   : > { %845 = vst.msk [vmem:[#allocation2 + $0x8] sm:$0xff] %vm832_vm2, %v842_v23  ;;  %850 = vst.msk [vmem:[#allocation3 + $0x8] sm:$0xff] %vm832_vm2, %v847_v24 }
 0x233   : > { %v858_v25 = vpop.permute.xlu1 %857  ;;  %v878_v26 = vpop.permute.xlu0 %877  ;;  %v899_v27 = vld [vmem:[#allocation3] sm:$0xff]  ;;  %v901_v32 = vld [vmem:[#allocation3 + $0x10] sm:$0xff] }
 0x234   : > { %861 = vst.msk [vmem:[#allocation2 + $0x10] sm:$0xff] %vm832_vm2, %v858_v25  ;;  %881 = vst.msk [vmem:[#allocation3 + $0x18] sm:$0xff] %vm832_vm2, %v878_v26  ;;  %v908_v28 = vsel %vm832_vm2, %v899_v27, 0  ;;  %v1002_v34 = vsel %vm832_vm2, %v901_v32, 0 }
 0x235   : > { %2210 = vmatpush3.bf16.xpose.msra.mxu0 %v908_v28 }
 0x236   : > { %2221 = vmatprep.subr.bf16.mxu0 %v2792_v0 }
 0x237   : > { %v873_v29 = vpop.permute.xlu0 %872  ;;  %v900_v30 = vld [vmem:[#allocation3 + $0x8] sm:$0xff] }
 0x238   : > { %876 = vst.msk [vmem:[#allocation2 + $0x18] sm:$0xff] %vm832_vm2, %v873_v29  ;;  %v955_v31 = vsel %vm832_vm2, %v900_v30, 0  ;;  %v896_v36 = vld [vmem:[#allocation2 + $0x8] sm:$0xff] }
 0x239   : > { %2216 = vmatpush3.bf16.xpose.msra.mxu1 %v955_v31 }
 0x23a   : > { %2227 = vmatprep.subr.bf16.mxu1 %v2792_v0 }
 0x23b   : > { %v902_v35 = vld [vmem:[#allocation3 + $0x18] sm:$0xff]  ;;  %v897_v38 = vld [vmem:[#allocation2 + $0x10] sm:$0xff] }
 0x23c   : > { %2212 = vmatmul.mubr.msk.bf16.vlgmr.msra.gmra.mrb[4].mxu0 %vm832_vm2, %v895_v33  ;;  %v1049_v37 = vsel %vm832_vm2, %v902_v35, 0 }
 0x23d   : > { %2222 = vmatpush3.bf16.xpose.msra.mxu0 %v1002_v34  ;;  %2223 = vmatprep.mubr.msk.bf16.mxu0 %vm2793_vm0, %v2792_v0 }
 0x23e   : > { %2233 = vmatprep.subr.bf16.mxu0 %v2792_v0 }
 0x23f   : > { %v898_v39 = vld [vmem:[#allocation2 + $0x18] sm:$0xff] }
 0x240   : > { %2218 = vmatmul.mubr.msk.bf16.vlgmr.msra.gmra.mrb[4].mxu1 %vm832_vm2, %v896_v36 }
 0x241   : > { %2228 = vmatpush3.bf16.xpose.msra.mxu1 %v1049_v37  ;;  %2229 = vmatprep.mubr.msk.bf16.mxu1 %vm2793_vm0, %v2792_v0 }
 0x242   : > { %2239 = vmatprep.subr.bf16.mxu1 %v2792_v0 }
 0x244   : > { %2224 = vmatmul.mubr.msk.bf16.vlgmr.msra.gmra.mrb[8].mxu0 %vm832_vm2, %v897_v38 }
 0x245   : > { %2235 = vmatprep.mubr.msk.bf16.mxu0 %vm2793_vm0, %v2792_v0  ;;  %2234 = vmatpush3.bf16.msra.mxu0 %v1193_v48 }
 0x246   : > { %2245 = vmatprep.subr.bf16.mxu0 %v2792_v0 }
 0x248   : > { %2230 = vmatmul.mubr.msk.bf16.vlgmr.msra.gmra.mrb[8].mxu1 %vm832_vm2, %v898_v39 }
 0x249   : > { %2241 = vmatprep.mubr.msk.bf16.mxu1 %vm2793_vm0, %v2792_v0 }
 0x30f   : > { %v944_v49 = vpop.f32.mrb[4].mxu0 }
 0x310   : > { %v2213_v50 = vpop.f32.mrb[5].mxu0  ;;  %v1093_v51 = vsel %vm1092_vm3, %v944_v49, -inf }
 0x311   : > { %1094 = vmax.xlane.f32.xlu1 %v1093_v51  ;;  %v947_v52 = vpop.f32.mrb[6].mxu0 }
 0x312   : > { %v2214_v53 = vpop.f32.mrb[7].mxu0  ;;  %v1096_v54 = vsel %vm1092_vm3, %v947_v52, -inf }
 0x313   : > { %v991_v55 = vpop.f32.mrb[4].mxu1  ;;  %1097 = vmax.xlane.f32.xlu0 %v1096_v54 }
 0x314   : > { %v2219_v56 = vpop.f32.mrb[5].mxu1  ;;  %v1099_v60 = vsel %vm1092_vm3, %v991_v55, -inf }
 0x315   : > { %v994_v57 = vpop.f32.mrb[6].mxu1 }
 0x316   : > { %v2220_v58 = vpop.f32.mrb[7].mxu1  ;;  %v1102_v59 = vsel %vm1092_vm3, %v994_v57, -inf }
 0x317   : > { %1103 = vmax.xlane.f32.xlu1 %v1102_v59  ;;  %1100 = vmax.xlane.f32.xlu0 %v1099_v60  ;;  %v1038_v61 = vpop.f32.mrb[8].mxu0 }
 0x318   : > { %v2225_v62 = vpop.f32.mrb[9].mxu0  ;;  %v1105_v2 = vsel %vm1092_vm3, %v1038_v61, -inf }
 0x319   : > { %v1041_v63 = vpop.f32.mrb[10].mxu0 }
 0x31a   : > { %v2226_v1 = vpop.f32.mrb[11].mxu0  ;;  %v1108_v5 = vsel %vm1092_vm3, %v1041_v63, -inf }
 0x31b   : > { %v1085_v6 = vpop.f32.mrb[8].mxu1  ;;  %1106 = vmax.xlane.f32.xlu0 %v1105_v2  ;;  %1109 = vmax.xlane.f32.xlu1 %v1108_v5 }
 0x31c   : > { %v2231_v7 = vpop.f32.mrb[9].mxu1  ;;  %v1111_v10 = vsel %vm1092_vm3, %v1085_v6, -inf }
 0x31d   : > { %v1088_v8 = vpop.f32.mrb[10].mxu1 }
 0x31e   : > { %v2232_v9 = vpop.f32.mrb[11].mxu1  ;;  %v1114_v11 = vsel %vm1092_vm3, %v1088_v8, -inf }
 0x31f   : > { %1112 = vmax.xlane.f32.xlu0 %v1111_v10  ;;  %1115 = vmax.xlane.f32.xlu1 %v1114_v11 }
 0x39e   : > { %v1095_v12 = vpop.xlane.xlu1 %1094 }
 0x39f   : > { %v1117_v13 = vsub.f32 %v944_v49, %v1095_v12 }
 0x3a0   : > { %v1098_v14 = vpop.xlane.xlu0 %1097 }
 0x3a1   : > { %v1125_v15 = vmul.f32 1.442695, %v1117_v13  ;;  %v1118_v16 = vsub.f32 %v947_v52, %v1098_v14 }
 0x3a3   : > { %2444 = vpow2.f32 %v1125_v15  ;;  %v1127_v17 = vmul.f32 1.442695, %v1118_v16 }
 0x3a4   : > { %v1104_v18 = vpop.xlane.xlu1 %1103  ;;  %v1101_v19 = vpop.xlane.xlu0 %1100 }
 0x3a5   : > { %2446 = vpow2.f32 %v1127_v17  ;;  %v1120_v20 = vsub.f32 %v994_v57, %v1104_v18  ;;  %v1119_v21 = vsub.f32 %v991_v55, %v1101_v19 }
 0x3a7   : > { %v1131_v22 = vmul.f32 1.442695, %v1120_v20  ;;  %v1129_v23 = vmul.f32 1.442695, %v1119_v21 }
 0x3a8   : > { %v1107_v24 = vpop.xlane.xlu0 %1106  ;;  %v1110_v42 = vpop.xlane.xlu1 %1109 }
 0x3a9   : > { %2448 = vpow2.f32 %v1131_v22  ;;  %v1121_v25 = vsub.f32 %v1038_v61, %v1107_v24  ;;  %v1122_v43 = vsub.f32 %v1041_v63, %v1110_v42 }
 0x3aa   : > { %2450 = vpow2.f32 %v1129_v23 }
 0x3ab   : > { %v1133_v26 = vmul.f32 1.442695, %v1121_v25  ;;  %v1135_v45 = vmul.f32 1.442695, %v1122_v43  ;;  %v1378_v43 = vld [vmem:[#allocation10 + $0x4] sm:$0xf] }
 0x3ac   : > { %v1113_v27 = vpop.xlane.xlu0 %1112  ;;  %v1116_v44 = vpop.xlane.xlu1 %1115 }
 0x3ad   : > { %v2445_v28 = vpop.eup %2444  ;;  %2452 = vpow2.f32 %v1133_v26  ;;  %v1123_v29 = vsub.f32 %v1085_v6, %v1113_v27  ;;  %v1124_v46 = vsub.f32 %v1088_v8, %v1116_v44  ;;  %v1433_v44 = vsel %vm1384_vm4, %v1378_v43, 0 }
 0x3ae   : > { %v1141_v30 = vsel %vm1092_vm3, %v2445_v28, 0.0 }
 0x3af   : > { %v2447_v31 = vpop.eup %2446  ;;  %v1137_v32 = vmul.f32 1.442695, %v1123_v29  ;;  %1142 = vadd.xlane.f32.xlu0 %v1141_v30  ;;  %v1139_v48 = vmul.f32 1.442695, %v1124_v46  ;;  %v1379_v46 = vld [vmem:[#allocation10 + $0x8] sm:$0xf] }
 0x3b0   : > { %v1144_v33 = vsel %vm1092_vm3, %v2447_v31, 0.0 }
 0x3b1   : > { %2454 = vpow2.f32 %v1137_v32  ;;  %1145 = vadd.xlane.f32.xlu1 %v1144_v33 }
 0x3b2   : > { %2456 = vpow2.f32 %v1135_v45 }
 0x3b3   : > { %v2449_v34 = vpop.eup %2448  ;;  %2458 = vpow2.f32 %v1139_v48 }
 0x3b4   : > { %v2451_v35 = vpop.eup %2450  ;;  %v1150_v36 = vsel %vm1092_vm3, %v2449_v34, 0.0 }
 0x3b5   : > { %v1147_v37 = vsel %vm1092_vm3, %v2451_v35, 0.0  ;;  %1151 = vadd.xlane.f32.xlu1 %v1150_v36 }
 0x3b6   : > { %1148 = vadd.xlane.f32.xlu0 %v1147_v37 }
 0x3b7   : > { %v2453_v38 = vpop.eup %2452 }
 0x3b8   : > { %v1153_v39 = vsel %vm1092_vm3, %v2453_v38, 0.0 }
 0x3ba   : > { %1154 = vadd.xlane.f32.xlu0 %v1153_v39 }
 0x3bb   : > { %v2455_v40 = vpop.eup %2454 }
 0x3bc   : > { %v1159_v41 = vsel %vm1092_vm3, %v2455_v40, 0.0  ;;  %v3267_v49 = vpop.eup %2456 }
 0x3bd   : > { %v1156_v50 = vsel %vm1092_vm3, %v3267_v49, 0.0  ;;  %v3271_v51 = vpop.eup %2458 }
 0x3be   : > { %1160 = vadd.xlane.f32.xlu0 %v1159_v41  ;;  %v1162_v52 = vsel %vm1092_vm3, %v3271_v51, 0.0  ;;  %v1377_v41 = vld [vmem:[#allocation10] sm:$0xf] }
 0x3bf   : > { %v1386_v42 = vsel %vm1384_vm4, %v1377_v41, 0 }
 0x3c6   : > { %867 = vrot.lane.b32.xlu1 %v3244_v47, %s2798_s5  ;;  %s3385_s5 = scalar_lea.hbm %s3552_s30, %s3513_s1 }
 0x3d4   : > { %852 = vrot.lane.b32.xlu0 %v3244_v47, %s2796_s0 }
 0x3ea   : > { %1157 = vadd.xlane.f32.xlu1 %v1156_v50 }
 0x3ee   : > { %1163 = vadd.xlane.f32.xlu1 %v1162_v52  ;;  %v1480_v52 = vsel %vm1384_vm4, %v1379_v46, 0 }
 0x3ff   : > { %882 = vrot.lane.b32.xlu1 %v3244_v47, %s2800_s4  ;;  %s3549_s4 = sld [smem:[#allocation33_spill]] }
 0x43c   : > { %v1143_v53 = vpop.xlane.xlu0 %1142 }
 0x43d   : > { %2460 = vrcp.f32 %v1143_v53 }
 0x43e   : > { %v1146_v54 = vpop.xlane.xlu1 %1145 }
 0x43f   : > { %2462 = vrcp.f32 %v1146_v54  ;;  %v1380_v54 = vld [vmem:[#allocation10 + $0xc] sm:$0xf] }
 0x442   : > { %v1152_v55 = vpop.xlane.xlu1 %1151 }
 0x443   : > { %v1149_v56 = vpop.xlane.xlu0 %1148 }
 0x444   : > { %2464 = vrcp.f32 %v1149_v56 }
 0x445   : > { %2466 = vrcp.f32 %v1152_v55 }
 0x446   : > { %v868_v57 = vpop.permute.xlu1 %867 }
 0x447   : > { %v2461_v58 = vpop.eup %2460  ;;  %v1155_v59 = vpop.xlane.xlu0 %1154  ;;  %871 = vst.msk [vmem:[#allocation4 + $0x10] sm:$0xff] %vm832_vm2, %v868_v57 }
 0x448   : > { %2468 = vrcp.f32 %v1155_v59  ;;  %v1181_v61 = vmul.f32 %v2461_v58, %v2445_v28  ;;  %v1527_v59 = vsel %vm1384_vm4, %v1380_v54, 0 }
 0x449   : > { %v2463_v60 = vpop.eup %2462 }
 0x44a   : > { %v1182_v62 = vmul.f32 %v2463_v60, %v2447_v31  ;;  %v1844_v11 = vsel %vm1092_vm3, %v1181_v61, 0.0 }
 0x44b   : > { %v1161_v63 = vpop.xlane.xlu0 %1160 }
 0x44c   : > { %2470 = vrcp.f32 %v1161_v63  ;;  %v1189_v47 = vpack.c.bf16 %v1182_v62, %v1181_v61  ;;  %v1851_v29 = vsel %vm1092_vm3, %v1182_v62, 0.0 }
 0x44e   : > { %v2465_v1 = vpop.eup %2464  ;;  %2236 = vmatmul.mubr.msk.bf16.vlgmr.msra.gmra.mrb[12].mxu0 %vm1092_vm3, %v1189_v47  ;;  %v1195_v2 = vld [vmem:[#allocation4 + $0x10] sm:$0xff] }
 0x44f   : > { %v1183_v5 = vmul.f32 %v2465_v1, %v2451_v35  ;;  %v853_v6 = vpop.permute.xlu0 %852  ;;  %2246 = vmatpush3.bf16.msra.mxu0 %v1195_v2  ;;  %2247 = vmatprep.mubr.msk.bf16.mxu0 %vm2793_vm0, %v2792_v0  ;;  %v2467_v7 = vpop.eup %2466 }
 0x450   : > { %856 = vst.msk [vmem:[#allocation4 + $0x8] sm:$0xff] %vm832_vm2, %v853_v6  ;;  %2257 = vmatprep.subr.bf16.mxu0 %v2792_v0  ;;  %v1184_v12 = vmul.f32 %v2467_v7, %v2449_v34 }
 0x451   : > { %v1845_v9 = vsel %vm1092_vm3, %v1183_v5, 0.0 }
 0x452   : > { %v2469_v8 = vpop.eup %2468  ;;  %v1846_v15 = vadd.f32 %v1845_v9, %v1844_v11  ;;  %v1190_v20 = vpack.c.bf16 %v1184_v12, %v1183_v5  ;;  %v1852_v27 = vsel %vm1092_vm3, %v1184_v12, 0.0 }
 0x453   : > { %v1185_v10 = vmul.f32 %v2469_v8, %v2453_v38  ;;  %v1853_v33 = vadd.f32 %v1852_v27, %v1851_v29 }
 0x455   : > { %v1847_v13 = vsel %vm1092_vm3, %v1185_v10, 0.0 }
 0x456   : > { %v2471_v14 = vpop.eup %2470  ;;  %v1848_v18 = vadd.f32 %v1847_v13, %v1846_v15 }
 0x457   : > { %v1187_v16 = vmul.f32 %v2471_v14, %v2455_v40  ;;  %v1194_v17 = vld [vmem:[#allocation4 + $0x8] sm:$0xff] }
 0x458   : > { %2240 = vmatpush3.bf16.msra.mxu1 %v1194_v17 }
 0x459   : > { %v1849_v19 = vsel %vm1092_vm3, %v1187_v16, 0.0  ;;  %2251 = vmatprep.subr.bf16.mxu1 %v2792_v0 }
 0x45a   : > { %v1850_v21 = vadd.f32 %v1849_v19, %v1848_v18 }
 0x45b   : > { %2242 = vmatmul.mubr.msk.bf16.vlgmr.msra.gmra.mrb[12].mxu1 %vm1092_vm3, %v1190_v20 }
 0x45c   : > { %v1859_v22 = vmul.f32 0.25, %v1850_v21  ;;  %2253 = vmatprep.mubr.msk.bf16.mxu1 %vm2793_vm0, %v2792_v0 }
 0x45e   : > { %1861 = vst.msk [vmem:[%s3292_s14] sm:$0xff] %vm1092_vm3, %v1859_v22 }
 0x477   : > { %v1158_v23 = vpop.xlane.xlu1 %1157 }
 0x478   : > { %2472 = vrcp.f32 %v1158_v23 }
 0x47b   : > { %v1164_v24 = vpop.xlane.xlu1 %1163 }
 0x47c   : > { %2474 = vrcp.f32 %v1164_v24 }
 0x47f   : > { %v883_v25 = vpop.permute.xlu1 %882 }
 0x480   : > { %886 = vst.msk [vmem:[#allocation4 + $0x18] sm:$0xff] %vm832_vm2, %v883_v25 }
 0x482   : > { %v2473_v26 = vpop.eup %2472 }
 0x483   : > { %v1186_v28 = vmul.f32 %v2473_v26, %v3267_v49 }
 0x485   : > { %v1854_v30 = vsel %vm1092_vm3, %v1186_v28, 0.0  ;;  %v1191_v31 = vpack.c.bf16 %v1186_v28, %v1185_v10 }
 0x486   : > { %v2475_v32 = vpop.eup %2474  ;;  %v1855_v36 = vadd.f32 %v1854_v30, %v1853_v33 }
 0x487   : > { %v1188_v34 = vmul.f32 %v2475_v32, %v3271_v51  ;;  %2248 = vmatmul.mubr.msk.bf16.vlgmr.msra.gmra.mrb[16].mxu0 %vm1092_vm3, %v1191_v31  ;;  %v1196_v35 = vld [vmem:[#allocation4 + $0x18] sm:$0xff]  ;;  %v2128_v32 = vld [vmem:[#allocation11] ss:$0 sm:$0xff] }
 0x488   : > { %2252 = vmatpush3.bf16.msra.mxu1 %v1196_v35  ;;  %2259 = vmatprep.mubr.msk.bf16.mxu0 %vm2793_vm0, %v2792_v0 }
 0x489   : > { %v1856_v37 = vsel %vm1092_vm3, %v1188_v34, 0.0  ;;  %v1192_v38 = vpack.c.bf16 %v1188_v34, %v1187_v16  ;;  %2263 = vmatprep.subr.bf16.mxu1 %v2792_v0  ;;  %2258 = vmatpush3.bf16.msra.mxu0 %v1386_v42 }
 0x48a   : > { %v1857_v39 = vadd.f32 %v1856_v37, %v1855_v36  ;;  %2269 = vmatprep.subr.bf16.mxu0 %v2792_v0 }
 0x48b   : > { %2254 = vmatmul.mubr.msk.bf16.vlgmr.msra.gmra.mrb[16].mxu1 %vm1092_vm3, %v1192_v38 }
 0x48c   : > { %v1860_v40 = vmul.f32 0.25, %v1857_v39  ;;  %2265 = vmatprep.mubr.msk.bf16.mxu1 %vm2793_vm0, %v2792_v0  ;;  %2264 = vmatpush3.bf16.msra.mxu1 %v1433_v44 }
 0x48d   : > { %2275 = vmatprep.subr.bf16.mxu1 %v2792_v0 }
 0x48e   : > { %1862 = vst.msk [vmem:[%s3292_s14 + $0x8] sm:$0xff] %vm1092_vm3, %v1860_v40 }
 0x521   : > { %v1234_v45 = vpop.f32.mrb[12].mxu0 }
 0x522   : > { %v2237_v48 = vpop.f32.mrb[13].mxu0 }
 0x523   : > { %v1237_v49 = vpop.f32.mrb[14].mxu0 }
 0x524   : > { %v1373_v50 = vpack.c.bf16 %v1237_v49, %v1234_v45  ;;  %v2238_v51 = vpop.f32.mrb[15].mxu0 }
 0x526   : > { %2260 = vmatmul.mubr.msk.bf16.vlgmr.msra.gmra.mrb[20].mxu0 %vm832_vm2, %v1373_v50 }
 0x527   : > { %2270 = vmatpush3.bf16.msra.mxu0 %v1480_v52  ;;  %2271 = vmatprep.mubr.msk.bf16.mxu0 %vm2793_vm0, %v2792_v0 }
 0x528   : > { %2281 = vmatprep.subr.bf16.mxu0 %v2792_v0 }
 0x52e   : > { %v1278_v53 = vpop.f32.mrb[12].mxu1 }
 0x52f   : > { %v2243_v55 = vpop.f32.mrb[13].mxu1 }
 0x530   : > { %v1281_v56 = vpop.f32.mrb[14].mxu1  ;;  %v2439_v55 = vld [vmem:[%s3548_s19 + $0x8] sm:$0xff]  }
 0x531   : > { %v1374_v57 = vpack.c.bf16 %v1281_v56, %v1278_v53  ;;  %v2244_v58 = vpop.f32.mrb[15].mxu1  ;;  %v2440_v56 = vld [vmem:[%s3549_s4] sm:$0xff]  }
 0x533   : > { %2266 = vmatmul.mubr.msk.bf16.vlgmr.msra.gmra.mrb[20].mxu1 %vm832_vm2, %v1374_v57  ;;  %v2441_v57 = vld [vmem:[%s3549_s4 + $0x8] sm:$0xff]  }
 0x534   : > { %2276 = vmatpush3.bf16.msra.mxu1 %v1527_v59  ;;  %2277 = vmatprep.mubr.msk.bf16.mxu1 %vm2793_vm0, %v2792_v0 }
 0x535   : > { %2289 = vmatprep.subr.bf16.mxu1 %v2792_v0 }
 0x55a   : > { %v1322_v60 = vpop.f32.mrb[16].mxu0 }
 0x55b   : > { %v2249_v61 = vpop.f32.mrb[17].mxu0 }
 0x55c   : > { %v1325_v62 = vpop.f32.mrb[18].mxu0 }
 0x55d   : > { %v1375_v63 = vpack.c.bf16 %v1325_v62, %v1322_v60  ;;  %v2250_v47 = vpop.f32.mrb[19].mxu0 }
 0x55e   : > { %v1366_v1 = vpop.f32.mrb[16].mxu1 }
 0x55f   : > { %v2255_v2 = vpop.f32.mrb[17].mxu1  ;;  %2272 = vmatmul.mubr.msk.bf16.vlgmr.msra.gmra.mrb[24].mxu0 %vm832_vm2, %v1375_v63 }
 0x560   : > { %v1369_v5 = vpop.f32.mrb[18].mxu1  ;;  %2285 = vmatprep.mubr.msk.bf16.mxu0 %vm2793_vm0, %v2792_v0  ;;  %v2129_v2 = vld [vmem:[#allocation13] ss:$0 sm:$0xff] }
 0x561   : > { %v1376_v6 = vpack.c.bf16 %v1369_v5, %v1366_v1  ;;  %v2256_v7 = vpop.f32.mrb[19].mxu1 }
 0x563   : > { %2278 = vmatmul.mubr.msk.bf16.vlgmr.msra.gmra.mrb[24].mxu1 %vm832_vm2, %v1376_v6 }
 0x564   : > { %2297 = vmatprep.mubr.msk.bf16.mxu1 %vm2793_vm0, %v2792_v0  ;;  %2290 = vmatpush3.bf16.msra.mxu1 %v2440_v56 }
 0x565   : > { %2291 = vmatprep.subr.bf16.mxu1 %v2792_v0 }
 0x568   : > { %2292 = vmatpush3.bf16.msra.mxu1 %v2441_v57 }
 0x569   : > { %2293 = vmatprep.subr.bf16.mxu1 %v2792_v0 }
 0x5f9   : > { %v1422_v8 = vpop.f32.mrb[20].mxu0 }
 0x5fa   : > { %v2261_v9 = vpop.f32.mrb[21].mxu0  ;;  %v1571_v13 = vsel %vm718_vm1, %v1422_v8, 0.0  ;;  %v2130_v8 = vld [vmem:[#allocation14] ss:$0 sm:$0xff] }
 0x5fb   : > { %v1425_v10 = vpop.f32.mrb[22].mxu0 }
 0x5fc   : > { %v2262_v11 = vpop.f32.mrb[23].mxu0  ;;  %v1578_v18 = vsel %vm718_vm1, %v1425_v10, 0.0 }
 0x606   : > { %v1469_v12 = vpop.f32.mrb[20].mxu1 }
 0x607   : > { %v1572_v14 = vsel %vm718_vm1, %v1469_v12, 0.0  ;;  %v2267_v15 = vpop.f32.mrb[21].mxu1 }
 0x608   : > { %v1573_v16 = vadd.f32 %v1572_v14, %v1571_v13  ;;  %v1472_v17 = vpop.f32.mrb[22].mxu1  ;;  %v2442_v13 = vld [vmem:[%s3549_s4 + $0x10] sm:$0xff]   ;;  %v2443_v14 = vld [vmem:[%s3549_s4 + $0x18] sm:$0xff]   ;;  %v2131_v15 = vld [vmem:[%s3550_s20] ss:$0 sm:$0xff]  ;;  %s1902_s20 = sshll.u32 %s3292_s14, 4  ;;  %s3388_s20 = int_to_ptr.vmem [resolvable:$true] %s1902_s20 }
 0x609   : > { %v1579_v19 = vsel %vm718_vm1, %v1472_v17, 0.0  ;;  %v2268_v20 = vpop.f32.mrb[23].mxu1  ;;  %2294 = vmatpush3.bf16.msra.mxu1 %v2442_v13  ;;  %s2654_s11 = scalar_lea.vmem %s3388_s20, 256 }
 0x60a   : > { %v1580_v21 = vadd.f32 %v1579_v19, %v1578_v18  ;;  %2295 = vmatprep.subr.bf16.mxu1 %v2792_v0  ;;  %p2655_p5 = scmp.ne.s32.totalorder %s3388_s20, %s2654_s11 }
 0x60c   : > { %p2656_p11 = pnand %p2655_p5, %p3553_p10 }
 0x60d   : > { %2296 = vmatpush3.bf16.msra.mxu1 %v2443_v14 }
 0x60e   : > { %p2657_p2 = pneg %p2656_p11 }
 0x632   : > { %v1516_v22 = vpop.f32.mrb[24].mxu0 }
 0x633   : > { %v1574_v23 = vsel %vm718_vm1, %v1516_v22, 0.0  ;;  %v2273_v24 = vpop.f32.mrb[25].mxu0 }
 0x634   : > { %v1575_v25 = vadd.f32 %v1574_v23, %v1573_v16  ;;  %v1519_v26 = vpop.f32.mrb[26].mxu0 }
 0x635   : > { %v1581_v27 = vsel %vm718_vm1, %v1519_v26, 0.0  ;;  %v2274_v28 = vpop.f32.mrb[27].mxu0 }
 0x636   : > { %v1582_v29 = vadd.f32 %v1581_v27, %v1580_v21  ;;  %v1563_v30 = vpop.f32.mrb[24].mxu1 }
 0x637   : > { %v1576_v31 = vsel %vm718_vm1, %v1563_v30, 0.0  ;;  %v2279_v33 = vpop.f32.mrb[25].mxu1 }
 0x638   : > { %v1577_v34 = vadd.f32 %v1576_v31, %v1575_v25  ;;  %v1566_v35 = vpop.f32.mrb[26].mxu1 }
 0x639   : > { %v1583_v36 = vsel %vm718_vm1, %v1566_v35, 0.0  ;;  %v2280_v37 = vpop.f32.mrb[27].mxu1 }
 0x63a   : > { %v1592_v38 = vadd.f32 %v2128_v32, %v1577_v34  ;;  %v1584_v39 = vadd.f32 %v1583_v36, %v1582_v29 }
 0x63c   : > { %v1593_v40 = vadd.f32 %v2128_v32, %v1584_v39  ;;  %v1594_v41 = vadd.f32 %v1592_v38, %v3189_v3 }
 0x63e   : > { %v1598_v42 = vsel %vm718_vm1, %v1594_v41, 0.0  ;;  %v1595_v43 = vadd.f32 %v1593_v40, %v3191_v4  ;;  %v2438_v4 = vld [vmem:[%s3548_s19] sm:$0xff]  }
 0x63f   : > { %1599 = vadd.xlane.f32.xlu0 %v1598_v42  ;;  %2282 = vmatpush3.bf16.msra.mxu0 %v2438_v4 }
 0x640   : > { %v1601_v44 = vsel %vm718_vm1, %v1595_v43, 0.0  ;;  %2283 = vmatprep.subr.bf16.mxu0 %v2792_v0  ;;  %v2135_v0 = vld [vmem:[%s3551_s15] ss:$0 sm:$0xff]  ;;  %s2801_s15 = smov [#allocation17]  }
 0x641   : > { %1602 = vadd.xlane.f32.xlu1 %v1601_v44  ;;  %s2658_s2 = sshll.u32 %s2801_s15, 4  ;;  %s2659_s2 = int_to_ptr.vmem [resolvable:$false] %s2658_s2 }
 0x642   : > { %s2660_s3 = scalar_lea.vmem %s2659_s2, 512  ;;  %p2661_p4 = scmp.lt.s32.totalorder %s3388_s20, %s2659_s2 }
 0x643   : > { %2284 = vmatpush3.bf16.msra.mxu0 %v2439_v55  ;;  %p2662_p9 = scmp.lt.s32.totalorder %s2660_s3, %s2654_s11 }
 0x645   : > { %p2663_p8 = por %p2662_p9, %p2661_p4 }
 0x647   : > { %p2664_p3 = pnand %p2663_p8, %p2657_p2 }
 0x6cc   : > { %v1600_v45 = vpop.xlane.xlu0 %1599 }
 0x6cd   : > { %v1605_v46 = vmul.f32 0.03125, %v1600_v45 }
 0x6ce   : > { %v1603_v48 = vpop.xlane.xlu1 %1602 }
 0x6cf   : > { %v1607_v49 = vsub.f32 %v1594_v41, %v1605_v46  ;;  %v1606_v50 = vmul.f32 0.03125, %v1603_v48 }
 0x6d1   : > { %v1608_v51 = vsub.f32 %v1595_v43, %v1606_v50  ;;  %v1609_v52 = vmul.f32 %v1607_v49, %v1607_v49 }
 0x6d3   : > { %v1611_v53 = vsel %vm718_vm1, %v1609_v52, 0.0  ;;  %v1610_v54 = vmul.f32 %v1608_v51, %v1608_v51 }
 0x6d4   : > { %1612 = vadd.xlane.f32.xlu0 %v1611_v53 }
 0x6d5   : > { %v1614_v3 = vsel %vm718_vm1, %v1610_v54, 0.0 }
 0x6d8   : > { %1615 = vadd.xlane.f32.xlu0 %v1614_v3 }
 0x761   : > { %v1613_v58 = vpop.xlane.xlu0 %1612 }
 0x762   : > { %v1617_v59 = vmul.f32 0.03125, %v1613_v58 }
 0x764   : > { %v1619_v60 = vadd.f32 1e-05, %v1617_v59 }
 0x765   : > { %v1616_v61 = vpop.xlane.xlu0 %1615 }
 0x766   : > { %2476 = vrsqrt.f32 %v1619_v60  ;;  %v1618_v62 = vmul.f32 0.03125, %v1616_v61 }
 0x768   : > { %v1620_v63 = vadd.f32 1e-05, %v1618_v62 }
 0x76a   : > { %2478 = vrsqrt.f32 %v1620_v63 }
 0x770   : > { %v2477_v47 = vpop.eup %2476 }
 0x771   : > { %v1623_v1 = vmul.f32 %v2477_v47, %v1607_v49 }
 0x773   : > { %v1631_v6 = vmul.f32 %v2129_v2, %v1623_v1 }
 0x774   : > { %v2479_v5 = vpop.eup %2478 }
 0x775   : > { %v1624_v7 = vmul.f32 %v2479_v5, %v1608_v51  ;;  %v1639_v10 = vadd.f32 %v2130_v8, %v1631_v6 }
 0x777   : > { %v1632_v9 = vmul.f32 %v2129_v2, %v1624_v7 }
 0x779   : > { %v1640_v11 = vadd.f32 %v2130_v8, %v1632_v9 }
 0x77b   : > { %v1641_v12 = vpack.c.bf16 %v1640_v11, %v1639_v10 }
 0x77d   : > { %2286 = vmatmul.mubr.msk.bf16.vlgmr.msra.gmra.mrb[28].mxu0 %vm718_vm1, %v1641_v12 }
 0x850   : > { %v1702_v16 = vpop.f32.mrb[28].mxu0 }
 0x851   : > { %v1703_v17 = vadd.f32 %v2131_v15, %v1702_v16  ;;  %v2287_v18 = vpop.f32.mrb[29].mxu0 }
 0x852   : > { %v1705_v19 = vpop.f32.mrb[30].mxu0 }
 0x853   : > { %v1706_v20 = vadd.f32 %v2131_v15, %v1705_v19  ;;  %v2288_v21 = vpop.f32.mrb[31].mxu0  ;;  %v1709_v22 = vmax.f32 %v1703_v17, 0.0 }
 0x855   : > { %v1710_v23 = vmax.f32 %v1706_v20, 0.0 }
 0x857   : > { %v1711_v24 = vpack.c.bf16 %v1710_v23, %v1709_v22 }
 0x859   : > { %2298 = vmatmul.mubr.msk.bf16.vlgmr.msra.gmra.mrb[28].mxu1 %vm1751_vm5, %v1711_v24 }
 0x92c   : > { %v1789_v25 = vpop.f32.mrb[28].mxu1 }
 0x92d   : > { %v1790_v26 = vadd.f32 %v2135_v0, %v1789_v25  ;;  %v2299_v27 = vpop.f32.mrb[29].mxu1 }
 0x92e   : > { %v1792_v28 = vpop.f32.mrb[30].mxu1 }
 0x92f   : > { %v1793_v29 = vadd.f32 %v2135_v0, %v1792_v28  ;;  %v2300_v30 = vpop.f32.mrb[31].mxu1  ;;  %v1796_v31 = vadd.f32 %v1790_v26, %v1639_v10 }
 0x931   : > { %v1800_v32 = vsel %vm718_vm1, %v1796_v31, 0.0  ;;  %v1797_v33 = vadd.f32 %v1793_v29, %v1640_v11 }
 0x932   : > { %1801 = vadd.xlane.f32.xlu1 %v1800_v32 }
 0x933   : > { %v1803_v34 = vsel %vm718_vm1, %v1797_v33, 0.0 }
 0x934   : > { %1804 = vadd.xlane.f32.xlu0 %v1803_v34 }
 0x9bf   : > { %v1802_v35 = vpop.xlane.xlu1 %1801 }
 0x9c0   : > { %v1806_v36 = vmul.f32 0.03125, %v1802_v35 }
 0x9c1   : > { %v1805_v37 = vpop.xlane.xlu0 %1804 }
 0x9c2   : > { %v1808_v38 = vsub.f32 %v1796_v31, %v1806_v36  ;;  %v1807_v39 = vmul.f32 0.03125, %v1805_v37 }
 0x9c4   : > { %v1809_v40 = vsub.f32 %v1797_v33, %v1807_v39  ;;  %v1810_v41 = vmul.f32 %v1808_v38, %v1808_v38 }
 0x9c6   : > { %v1812_v42 = vsel %vm718_vm1, %v1810_v41, 0.0  ;;  %v1811_v43 = vmul.f32 %v1809_v40, %v1809_v40 }
 0x9c7   : > { %1813 = vadd.xlane.f32.xlu1 %v1812_v42 }
 0x9c8   : > { %v1815_v44 = vsel %vm718_vm1, %v1811_v43, 0.0 }
 0x9c9   : > { %1816 = vadd.xlane.f32.xlu0 %v1815_v44 }
 0x9ca   : > { %2667 = shalt.err (!%p2664_p3)
}
 0x9cb   : > { %s2668_s14 = scalar_lea.hbm %s3385_s5, 256  ;;  %s2672_s15 = scalar_lea.hbm %s3552_s30, 512 }
 0x9cc   : > { %p2669_p12 = scmp.ne.s32.totalorder %s3385_s5, %s2668_s14  ;;  %p2673_p1 = scmp.lt.u32.totalorder %s3385_s5, %s3552_s30 }
 0x9cd   : > { %p2674_p7 = scmp.lt.u32.totalorder %s2672_s15, %s2668_s14  ;;  %p2676_p5 = scmp.lt.u32.totalorder %s2668_s14, %s3385_s5 }
 0x9ce   : > { %p2670_p13 = pnand %p2669_p12, %p3553_p10 }
 0x9cf   : > { %p2675_p6 = por %p2674_p7, %p2673_p1 }
 0x9d0   : > { %p2671_p0 = pneg %p2670_p13 }
 0x9d1   : > { %p2677_p11 = por %p2676_p5, %p2675_p6 }
 0x9d3   : > { %p2678_p2 = pnand %p2677_p11, %p2671_p0 }
 0x9d5   : > { %2681 = shalt.err (!%p2678_p2)
}
 0x9d6   : > { %s3514_s3 = smov 128   ;;  %s2803_s11 = smov 8  }
 0x9d7   : > { %2324 = dma.vmem_to_hbm [thread:$0]  (%p3553_p10), %s3388_s20, 256, %s3385_s5, %s1869_s12, %s3514_s3, %s3514_s3, %s2803_s11  }
 0x9d8   : > { %s3554_s18 = sld [smem:[#allocation35_spill]]  ;;  %s3555_s20 = sld [smem:[#allocation36_spill]] }
 0x9d9   : > { %s668_s12 = scalar_lea.vmem [#allocation16], %s3152_s23  ;;  %s3556_s2 = sshll.u32 %s2772_s27, 8 }
 0x9da   : > { %s1884_s15 = sshll.u32 %s668_s12, 4  ;;  %s1864_s23 = scalar_lea.sflag [#allocation7], %s3149_s13  ;;  %s3432_s15 = int_to_ptr.vmem [resolvable:$true] %s1884_s15 }
 0x9db   : > { %s2682_s0 = scalar_lea.vmem %s3432_s15, 256  ;;  %s2804_s5 = smov [#allocation16]  }
 0x9dc   : > { %p2683_p4 = scmp.ne.s32.totalorder %s3432_s15, %s2682_s0  ;;  %s2686_s27 = sshll.u32 %s2804_s5, 4  ;;  %s2687_s27 = int_to_ptr.vmem [resolvable:$false] %s2686_s27 }
 0x9dd   : > { %p2689_p3 = scmp.lt.s32.totalorder %s3432_s15, %s2687_s27 }
 0x9de   : > { %v2141_v53 = vld [vmem:[%s3554_s18] ss:$0 sm:$0xff]  ;;  %s3557_s18 = sld [smem:[#allocation37_spill]]  ;;  %p2684_p9 = pnand %p2683_p4, %p3553_p10 }
 0x9df   : > { %v2142_v4 = vld [vmem:[%s3555_s20] ss:$0 sm:$0xff]  ;;  %s2688_s20 = scalar_lea.vmem %s2687_s27, 512 }
 0x9e0   : > { %p2685_p8 = pneg %p2684_p9  ;;  %p2690_p12 = scmp.lt.s32.totalorder %s2688_s20, %s2682_s0 }
 0x9e2   : > { %p2691_p13 = por %p2690_p12, %p2689_p3 }
 0x9e4   : > { %s3430_s3 = scalar_lea.hbm %s3557_s18, %s3556_s2  ;;  %p2692_p0 = pnand %p2691_p13, %p2685_p8 }
 0xa54   : > { %v1814_v45 = vpop.xlane.xlu1 %1813 }
 0xa55   : > { %v1818_v46 = vmul.f32 0.03125, %v1814_v45 }
 0xa56   : > { %v1817_v48 = vpop.xlane.xlu0 %1816 }
 0xa57   : > { %v1820_v49 = vadd.f32 1e-05, %v1818_v46  ;;  %v1819_v50 = vmul.f32 0.03125, %v1817_v48 }
 0xa59   : > { %2480 = vrsqrt.f32 %v1820_v49  ;;  %v1821_v51 = vadd.f32 1e-05, %v1819_v50 }
 0xa5b   : > { %2482 = vrsqrt.f32 %v1821_v51 }
 0xa63   : > { %v2481_v52 = vpop.eup %2480 }
 0xa64   : > { %v1824_v54 = vmul.f32 %v2481_v52, %v1808_v38 }
 0xa65   : > { %v2483_v3 = vpop.eup %2482 }
 0xa66   : > { %v1832_v55 = vmul.f32 %v2141_v53, %v1824_v54  ;;  %v1825_v56 = vmul.f32 %v2483_v3, %v1809_v40 }
 0xa68   : > { %v1840_v57 = vadd.f32 %v2142_v4, %v1832_v55  ;;  %v1833_v58 = vmul.f32 %v2141_v53, %v1825_v56 }
 0xa6a   : > { %v1841_v59 = vadd.f32 %v2142_v4, %v1833_v58  ;;  %1842 = vst.msk [vmem:[%s668_s12] sm:$0xff] %vm718_vm1, %v1840_v57 }
 0xa6c   : > { %1843 = vst.msk [vmem:[%s668_s12 + $0x8] sm:$0xff] %vm718_vm1, %v1841_v59 }
 0xa6d   : > { %2695 = shalt.err (!%p2692_p0)
}
 0xa6e   : > { %s2696_s12 = scalar_lea.hbm %s3430_s3, 256  ;;  %s2700_s14 = scalar_lea.hbm %s3557_s18, 512 }
 0xa6f   : > { %p2697_p1 = scmp.ne.s32.totalorder %s3430_s3, %s2696_s12  ;;  %p2701_p5 = scmp.lt.u32.totalorder %s3430_s3, %s3557_s18 }
 0xa70   : > { %p2702_p11 = scmp.lt.u32.totalorder %s2700_s14, %s2696_s12  ;;  %p2704_p4 = scmp.lt.u32.totalorder %s2696_s12, %s3430_s3 }
 0xa71   : > { %p2698_p7 = pnand %p2697_p1, %p3553_p10 }
 0xa72   : > { %p2703_p2 = por %p2702_p11, %p2701_p5 }
 0xa73   : > { %p2699_p6 = pneg %p2698_p7 }
 0xa74   : > { %p2705_p9 = por %p2704_p4, %p2703_p2 }
 0xa76   : > { %p2706_p8 = pnand %p2705_p9, %p2699_p6 }
 0xa78   : > { %2709 = shalt.err (!%p2706_p8)
}
 0xa79   : > { %s3558_s0 = smov 128  }
 0xa7a   : > { %2323 = dma.vmem_to_hbm [thread:$0]  (%p3553_p10), %s3432_s15, 256, %s3430_s3, %s1864_s23, %s3558_s0, %s3558_s0, %s2803_s11  }
 0xa7b PF: > { %s1917_s20 = sand.u32 1, %s2760_s24   ;;  %p3559_p3 = scmp.ne.s32.totalorder %s3539_s21, 0 }
 0xa7c   : > { %p3560_p12 = scmp.ge.s32.totalorder %s2780_s29, 2  ;;  %s1918_s12 = scalar_lea.sflag [#allocation7], %s1917_s20 }
 0xa7e   : > { %p2348_p13 = pnand %p3560_p12, %p3559_p3 }
 0xa80   : > { %2751 = dma.done.wait (!%p2348_p13), %s1918_s12, 256  }
 0xa81   : > { %2753 = vsyncadd (!%p2348_p13), %s1918_s12, 4294967040  ;;  %s1927_s10 = scalar_lea.sflag [#allocation18], %s1917_s20 }
 0xa82   : > { %2755 = dma.done.wait (!%p2348_p13), %s1927_s10, 256  }
 0xa83   : > { %2757 = vsyncadd (!%p2348_p13), %s1927_s10, 4294967040  ;;  %s40_s29 = sadd.s32 1, %s2780_s29   ;;  %s3561_s24 = smov %s2764_s25 }
 0xa84   : > { %p37_p0 = scmp.ge.s32.totalorder %s40_s29, 4   ;;  %s3562_s25 = smov %s2768_s26 }
 0xa85   : > { %s3563_s26 = smov %s3097_s17  ;;  %s3564_s27 = smov %s2776_s28 }
 0xa86   : > { %s3565_s28 = smov %s3567_s16  ;;  %39 = sbr.rel (!%p37_p0) target bundleno = 26 (0x1a), region = 184 }
 0xa8d   :  { %1932 = vsyncpa [#allocation6], 1 }
 0xa8e   :  { %1934 = vsyncpa [#allocation6 + $0x1], 1 }
 0xa8f   :  { %1935 = vsyncpa [#allocation9], 1 }
 0xa90   :  { %1936 = vsyncpa [#allocation12], 1 }
 0xa91   :  { %1937 = vsyncpa [#allocation15], 1 }
 0xa92   :  { %1938 = vsyncpa [#allocation7], 1 }
 0xa93   :  { %1940 = vsyncpa [#allocation7 + $0x1], 1 }
 0xa94   :  { %1941 = vsyncpa [#allocation18], 1 }
 0xa95   :  { %1943 = vsyncpa [#allocation18 + $0x1], 1 }

</bundles_post_ra>
